<compile_context>
chip_gen: v5e
topology: v5e:2x2
jax: 0.10.0
libtpu: 0.0.40
codegen_flags: <defaults>
</compile_context>

<pallas_src>
import functools

import jax
import jax.numpy as jnp
from jax.experimental import pallas as pl
from jax.experimental.pallas import tpu as pltpu

KSIZES = (1, 3, 5, 7, 9)          # the five conv branches per input
KMAX = max(KSIZES)                # 9 distinct shift offsets
PMAX = (KMAX - 1) // 2            # 4 -> pad once for the widest kernel
NB = len(KSIZES)                  # 5 branches per input


# ----------------------------------------------------------------------------
# Fused kernel: (conv x5 per input -> maxpool -> bias+ReLU) -> concat -> dense
# ----------------------------------------------------------------------------
def _im2col_slab(x_ref, pad_scr, L):
    """In-kernel 'same' zero padding + shifted-view im2col slab (B*L, 9*C)."""
    B = x_ref.shape[0]
    C = x_ref.shape[2]

    pad_scr[...] = jnp.zeros_like(pad_scr)
    pad_scr[:, PMAX:PMAX + L, :] = x_ref[...]
    xpad = pad_scr[...]                                   # (B, L + 2*PMAX, C)

    # Only the 9 distinct shifted views are materialized (not 25 per-tap ones).
    return jnp.concatenate(
        [xpad[:, d:d + L, :] for d in range(KMAX)], axis=2
    ).reshape(B * L, KMAX * C)


def _fused_kernel(cdr3_ref, pep_ref,
                  wblk_ref, bias_ref,
                  w1_ref, b1_ref, w2_ref, b2_ref,
                  out_ref, pad_c_scr, pad_p_scr, *, L_c, L_p, F):
    B = cdr3_ref.shape[0]

    slab_c = _im2col_slab(cdr3_ref, pad_c_scr, L_c)       # (B*L_c, 9*C)
    slab_p = _im2col_slab(pep_ref, pad_p_scr, L_p)        # (B*L_p, 9*C)
    slab = jnp.concatenate([slab_c, slab_p], axis=0)      # (B*(L_c+L_p), 9*C)

    # ONE MXU pass covers all 10 conv branches of both inputs.  cdr3 rows only
    # read columns [:5F]; pep rows only read columns [5F:], so the cross terms
    # are computed but never used (they still fit inside one MXU tile pass).
    conv = jnp.dot(slab, wblk_ref[...],
                   preferred_element_type=jnp.float32)    # (B*(Lc+Lp), 10*F)

    n_c = B * L_c
    fo = NB * F
    pooled_c = jnp.max(conv[:n_c, :fo].reshape(B, L_c, fo), axis=1)   # (B, 5F)
    pooled_p = jnp.max(conv[n_c:, fo:].reshape(B, L_p, fo), axis=1)   # (B, 5F)

    # bias + ReLU commute with the max pool -> apply on the pooled (B, 10F).
    feat = jnp.concatenate([pooled_c, pooled_p], axis=1)
    feat = jnp.maximum(feat + bias_ref[...], 0.0)          # (B, 10*F), VMEM only

    h = jnp.dot(feat, w1_ref[...],
                preferred_element_type=jnp.float32) + b1_ref[...]
    h = jnp.maximum(h, 0.0)
    # TODO(synk): nn.Dropout(p=0.1) is identity in eval mode; training-mode
    # stochastic masking is not implemented here.
    z = jnp.dot(h, w2_ref[...],
                preferred_element_type=jnp.float32) + b2_ref[...]
    out_ref[...] = 1.0 / (1.0 + jnp.exp(-z))               # Sigmoid


def forward_pallas(cdr3_input, pep_input, packed):
    """cdr3_input: (B, L_c, C), pep_input: (B, L_p, C) -> (B, 1)."""
    B, L_c, C = cdr3_input.shape
    _, L_p, _ = pep_input.shape
    F = packed["bias"].shape[-1] // (2 * NB)

    kernel = functools.partial(_fused_kernel, L_c=L_c, L_p=L_p, F=F)
    vmem = pl.BlockSpec(memory_space=pltpu.MemorySpace.VMEM)
    return pl.pallas_call(
        kernel,
        out_shape=jax.ShapeDtypeStruct((B, 1), jnp.float32),
        in_specs=[vmem] * 8,
        out_specs=vmem,
        scratch_shapes=[
            pltpu.VMEM((B, L_c + 2 * PMAX, C), jnp.float32),  # padded cdr3
            pltpu.VMEM((B, L_p + 2 * PMAX, C), jnp.float32),  # padded pep
        ],
    )(cdr3_input.astype(jnp.float32), pep_input.astype(jnp.float32),
      packed["wblk"], packed["bias"],
      packed["w1"], packed["b1"], packed["w2"], packed["b2"])


# ----------------------------------------------------------------------------
# Parameter construction (deterministic, synthetic) + host-side weight packing
# ----------------------------------------------------------------------------
def init_params(key, feature_num, filter_num=16, hidden_num=32):
    """Raw, torch-layout-equivalent parameters (per-tap conv weights)."""
    ks = jax.random.split(key, 6)

    def conv_branch(k):
        sub = jax.random.split(k, 2 * NB)
        taps, biases = [], []
        for i, ksz in enumerate(KSIZES):
            # torch weight (F, C, ksz) stored as ksz slices of (C, F)
            w = jax.random.normal(sub[2 * i], (ksz, feature_num, filter_num),
                                  dtype=jnp.float32) * 0.1
            b = jax.random.normal(sub[2 * i + 1], (filter_num,),
                                  dtype=jnp.float32) * 0.1
            taps.append(w)
            biases.append(b)
        return taps, biases

    cdr3_taps, cdr3_b = conv_branch(ks[0])
    pep_taps, pep_b = conv_branch(ks[1])

    in_feat = filter_num * NB * 2                         # 160 for defaults
    w1 = jax.random.normal(ks[2], (in_feat, hidden_num), dtype=jnp.float32) * 0.1
    b1 = jax.random.normal(ks[3], (1, hidden_num), dtype=jnp.float32) * 0.1
    w2 = jax.random.normal(ks[4], (hidden_num, 1), dtype=jnp.float32) * 0.1
    b2 = jax.random.normal(ks[5], (1, 1), dtype=jnp.float32) * 0.1
    return dict(cdr3_taps=cdr3_taps, cdr3_b=cdr3_b,
                pep_taps=pep_taps, pep_b=pep_b,
                w1=w1, b1=b1, w2=w2, b2=b2)


def _pack_branch(taps, biases, C, F):
    """Build the (9*C, 5*F) block weight (zeros where a branch's kernel does
    not cover the offset) and the (1, 5*F) concatenated bias row."""
    wblk = jnp.zeros((KMAX * C, NB * F), dtype=jnp.float32)
    for bi, k in enumerate(KSIZES):
        pad = (k - 1) // 2
        for d in range(k):
            o = PMAX - pad + d                            # offset into the slab
            wblk = wblk.at[o * C:(o + 1) * C, bi * F:(bi + 1) * F].set(taps[bi][d])
    bias_row = jnp.concatenate(biases)[None, :]           # (1, 5*F)
    return wblk, bias_row


def pack_params(raw, feature_num, filter_num):
    wblk_c, bias_c = _pack_branch(raw["cdr3_taps"], raw["cdr3_b"],
                                  feature_num, filter_num)
    wblk_p, bias_p = _pack_branch(raw["pep_taps"], raw["pep_b"],
                                  feature_num, filter_num)
    # One combined block weight for BOTH inputs: cdr3 columns, then pep columns.
    wblk = jnp.concatenate([wblk_c, wblk_p], axis=1)      # (9*C, 10*F)
    bias = jnp.concatenate([bias_c, bias_p], axis=1)      # (1, 10*F)
    return dict(wblk=wblk, bias=bias,
                w1=raw["w1"], b1=raw["b1"], w2=raw["w2"], b2=raw["b2"])


# ----------------------------------------------------------------------------
# Pure-JAX reference (same semantics as the PyTorch module, eval mode)
# ----------------------------------------------------------------------------
def forward_ref(cdr3_input, pep_input, raw):
    def branch(x, taps, biases):
        B, L, C = x.shape
        F = taps[0].shape[-1]
        xpad = jnp.pad(x.astype(jnp.float32), ((0, 0), (PMAX, PMAX), (0, 0)))
        outs = []
        for bi, k in enumerate(KSIZES):
            pad = (k - 1) // 2
            acc = jnp.zeros((B, L, F), dtype=jnp.float32)
            for d in range(k):
                start = PMAX - pad + d
                acc = acc + jnp.einsum("blc,cf->blf",
                                       xpad[:, start:start + L, :], taps[bi][d])
            acc = jnp.maximum(acc + biases[bi][None, None, :], 0.0)
            outs.append(jnp.max(acc, axis=1))
        return jnp.concatenate(outs, axis=1)

    feat = jnp.concatenate(
        [branch(cdr3_input, raw["cdr3_taps"], raw["cdr3_b"]),
         branch(pep_input, raw["pep_taps"], raw["pep_b"])], axis=1)
    h = jnp.maximum(feat @ raw["w1"] + raw["b1"], 0.0)
    return jax.nn.sigmoid(h @ raw["w2"] + raw["b2"])


if __name__ == "__main__":
    key = jax.random.PRNGKey(0)
    k_in, k_pep, k_par = jax.random.split(key, 3)

    B, L_CDR3, L_PEP, FEATURE_NUM = 2, 18, 12, 20   # BLOSUM feature dim = 20
    FILTER_NUM, HIDDEN_NUM = 16, 32

    cdr3_input = jax.random.normal(k_in, (B, L_CDR3, FEATURE_NUM),
                                   dtype=jnp.float32)
    pep_input = jax.random.normal(k_pep, (B, L_PEP, FEATURE_NUM),
                                  dtype=jnp.float32)

    raw_params = init_params(k_par, FEATURE_NUM, FILTER_NUM, HIDDEN_NUM)
    packed_params = pack_params(raw_params, FEATURE_NUM, FILTER_NUM)

    out = forward_pallas(cdr3_input, pep_input, packed_params)
    out = jax.block_until_ready(out)

    ref = jax.block_until_ready(forward_ref(cdr3_input, pep_input, raw_params))
    assert out.shape == (B, 1)
    assert jnp.allclose(out, ref, atol=1e-5, rtol=1e-5), (out, ref)
    print("KERNEL_OK")
</pallas_src>

<mosaic_0001>
module attributes {stable_mosaic.version = 11 : i64} {
  func.func @_fused_kernel(%arg0: memref<2x18x20xf32, #tpu.memory_space<vmem>>, %arg1: memref<2x12x20xf32, #tpu.memory_space<vmem>>, %arg2: memref<180x160xf32, #tpu.memory_space<vmem>>, %arg3: memref<1x160xf32, #tpu.memory_space<vmem>>, %arg4: memref<160x32xf32, #tpu.memory_space<vmem>>, %arg5: memref<1x32xf32, #tpu.memory_space<vmem>>, %arg6: memref<32x1xf32, #tpu.memory_space<vmem>>, %arg7: memref<1x1xf32, #tpu.memory_space<vmem>>, %arg8: memref<2x1xf32, #tpu.memory_space<vmem>>, %arg9: memref<2x26x20xf32, #tpu.memory_space<vmem>>, %arg10: memref<2x20x20xf32, #tpu.memory_space<vmem>>) attributes {dimension_semantics = [], scalar_prefetch = 0 : i64, scratch_operands = 2 : i64, tpu.core_type = #tpu.core_type<tc>} {
    %cst = arith.constant 0.000000e+00 : f32
    %0 = vector.broadcast %cst : f32 to vector<2x26x20xf32>
    %c0 = arith.constant 0 : index
    %c0_0 = arith.constant 0 : index
    %c0_1 = arith.constant 0 : index
    %1 = vector.load %arg9[%c0, %c0_0, %c0_1] : memref<2x26x20xf32, #tpu.memory_space<vmem>>, vector<2x26x20xf32>
    tpu.vector_store %arg9[%c0, %c0_0, %c0_1], %0 {strides = array<i32>} : memref<2x26x20xf32, #tpu.memory_space<vmem>>, vector<2x26x20xf32>,
    %c0_2 = arith.constant 0 : index
    %c0_3 = arith.constant 0 : index
    %c0_4 = arith.constant 0 : index
    %2 = vector.load %arg0[%c0_2, %c0_3, %c0_4] : memref<2x18x20xf32, #tpu.memory_space<vmem>>, vector<2x18x20xf32>
    %c0_5 = arith.constant 0 : index
    %c4 = arith.constant 4 : index
    %c0_6 = arith.constant 0 : index
    %3 = vector.load %arg9[%c0_5, %c4, %c0_6] : memref<2x26x20xf32, #tpu.memory_space<vmem>>, vector<2x18x20xf32>
    tpu.vector_store %arg9[%c0_5, %c4, %c0_6], %2 {strides = array<i32>} : memref<2x26x20xf32, #tpu.memory_space<vmem>>, vector<2x18x20xf32>,
    %c0_7 = arith.constant 0 : index
    %c0_8 = arith.constant 0 : index
    %c0_9 = arith.constant 0 : index
    %4 = vector.load %arg9[%c0_7, %c0_8, %c0_9] : memref<2x26x20xf32, #tpu.memory_space<vmem>>, vector<2x26x20xf32>
    %5 = vector.extract_strided_slice %4 {offsets = [0, 0, 0], sizes = [2, 18, 20], strides = [1, 1, 1]} : vector<2x26x20xf32> to vector<2x18x20xf32>
    %6 = vector.extract_strided_slice %4 {offsets = [0, 1, 0], sizes = [2, 18, 20], strides = [1, 1, 1]} : vector<2x26x20xf32> to vector<2x18x20xf32>
    %7 = vector.extract_strided_slice %4 {offsets = [0, 2, 0], sizes = [2, 18, 20], strides = [1, 1, 1]} : vector<2x26x20xf32> to vector<2x18x20xf32>
    %8 = vector.extract_strided_slice %4 {offsets = [0, 3, 0], sizes = [2, 18, 20], strides = [1, 1, 1]} : vector<2x26x20xf32> to vector<2x18x20xf32>
    %9 = vector.extract_strided_slice %4 {offsets = [0, 4, 0], sizes = [2, 18, 20], strides = [1, 1, 1]} : vector<2x26x20xf32> to vector<2x18x20xf32>
    %10 = vector.extract_strided_slice %4 {offsets = [0, 5, 0], sizes = [2, 18, 20], strides = [1, 1, 1]} : vector<2x26x20xf32> to vector<2x18x20xf32>
    %11 = vector.extract_strided_slice %4 {offsets = [0, 6, 0], sizes = [2, 18, 20], strides = [1, 1, 1]} : vector<2x26x20xf32> to vector<2x18x20xf32>
    %12 = vector.extract_strided_slice %4 {offsets = [0, 7, 0], sizes = [2, 18, 20], strides = [1, 1, 1]} : vector<2x26x20xf32> to vector<2x18x20xf32>
    %13 = vector.extract_strided_slice %4 {offsets = [0, 8, 0], sizes = [2, 18, 20], strides = [1, 1, 1]} : vector<2x26x20xf32> to vector<2x18x20xf32>
    %14 = tpu.concatenate %5, %6, %7, %8, %9, %10, %11, %12, %13 in 2 : vector<2x18x20xf32>, vector<2x18x20xf32>, vector<2x18x20xf32>, vector<2x18x20xf32>, vector<2x18x20xf32>, vector<2x18x20xf32>, vector<2x18x20xf32>, vector<2x18x20xf32>, vector<2x18x20xf32> -> vector<2x18x180xf32>
    %15 = vector.shape_cast %14 : vector<2x18x180xf32> to vector<36x180xf32>
    %cst_10 = arith.constant 0.000000e+00 : f32
    %16 = vector.broadcast %cst_10 : f32 to vector<2x20x20xf32>
    %c0_11 = arith.constant 0 : index
    %c0_12 = arith.constant 0 : index
    %c0_13 = arith.constant 0 : index
    %17 = vector.load %arg10[%c0_11, %c0_12, %c0_13] : memref<2x20x20xf32, #tpu.memory_space<vmem>>, vector<2x20x20xf32>
    tpu.vector_store %arg10[%c0_11, %c0_12, %c0_13], %16 {strides = array<i32>} : memref<2x20x20xf32, #tpu.memory_space<vmem>>, vector<2x20x20xf32>,
    %c0_14 = arith.constant 0 : index
    %c0_15 = arith.constant 0 : index
    %c0_16 = arith.constant 0 : index
    %18 = vector.load %arg1[%c0_14, %c0_15, %c0_16] : memref<2x12x20xf32, #tpu.memory_space<vmem>>, vector<2x12x20xf32>
    %c0_17 = arith.constant 0 : index
    %c4_18 = arith.constant 4 : index
    %c0_19 = arith.constant 0 : index
    %19 = vector.load %arg10[%c0_17, %c4_18, %c0_19] : memref<2x20x20xf32, #tpu.memory_space<vmem>>, vector<2x12x20xf32>
    tpu.vector_store %arg10[%c0_17, %c4_18, %c0_19], %18 {strides = array<i32>} : memref<2x20x20xf32, #tpu.memory_space<vmem>>, vector<2x12x20xf32>,
    %c0_20 = arith.constant 0 : index
    %c0_21 = arith.constant 0 : index
    %c0_22 = arith.constant 0 : index
    %20 = vector.load %arg10[%c0_20, %c0_21, %c0_22] : memref<2x20x20xf32, #tpu.memory_space<vmem>>, vector<2x20x20xf32>
    %21 = vector.extract_strided_slice %20 {offsets = [0, 0, 0], sizes = [2, 12, 20], strides = [1, 1, 1]} : vector<2x20x20xf32> to vector<2x12x20xf32>
    %22 = vector.extract_strided_slice %20 {offsets = [0, 1, 0], sizes = [2, 12, 20], strides = [1, 1, 1]} : vector<2x20x20xf32> to vector<2x12x20xf32>
    %23 = vector.extract_strided_slice %20 {offsets = [0, 2, 0], sizes = [2, 12, 20], strides = [1, 1, 1]} : vector<2x20x20xf32> to vector<2x12x20xf32>
    %24 = vector.extract_strided_slice %20 {offsets = [0, 3, 0], sizes = [2, 12, 20], strides = [1, 1, 1]} : vector<2x20x20xf32> to vector<2x12x20xf32>
    %25 = vector.extract_strided_slice %20 {offsets = [0, 4, 0], sizes = [2, 12, 20], strides = [1, 1, 1]} : vector<2x20x20xf32> to vector<2x12x20xf32>
    %26 = vector.extract_strided_slice %20 {offsets = [0, 5, 0], sizes = [2, 12, 20], strides = [1, 1, 1]} : vector<2x20x20xf32> to vector<2x12x20xf32>
    %27 = vector.extract_strided_slice %20 {offsets = [0, 6, 0], sizes = [2, 12, 20], strides = [1, 1, 1]} : vector<2x20x20xf32> to vector<2x12x20xf32>
    %28 = vector.extract_strided_slice %20 {offsets = [0, 7, 0], sizes = [2, 12, 20], strides = [1, 1, 1]} : vector<2x20x20xf32> to vector<2x12x20xf32>
    %29 = vector.extract_strided_slice %20 {offsets = [0, 8, 0], sizes = [2, 12, 20], strides = [1, 1, 1]} : vector<2x20x20xf32> to vector<2x12x20xf32>
    %30 = tpu.concatenate %21, %22, %23, %24, %25, %26, %27, %28, %29 in 2 : vector<2x12x20xf32>, vector<2x12x20xf32>, vector<2x12x20xf32>, vector<2x12x20xf32>, vector<2x12x20xf32>, vector<2x12x20xf32>, vector<2x12x20xf32>, vector<2x12x20xf32>, vector<2x12x20xf32> -> vector<2x12x180xf32>
    %31 = vector.shape_cast %30 : vector<2x12x180xf32> to vector<24x180xf32>
    %32 = tpu.concatenate %15, %31 in 0 : vector<36x180xf32>, vector<24x180xf32> -> vector<60x180xf32>
    %c0_23 = arith.constant 0 : index
    %c0_24 = arith.constant 0 : index
    %33 = vector.load %arg2[%c0_23, %c0_24] : memref<180x160xf32, #tpu.memory_space<vmem>>, vector<180x160xf32>
    %cst_25 = arith.constant dense<0.000000e+00> : vector<60x160xf32>
    %34 = tpu.matmul %32, %33, %cst_25 {dimension_numbers = #tpu.dot_dimension_numbers<[1], [0], [0], [1], [0, 0, 1, 1], [], []>} : vector<60x180xf32>, vector<180x160xf32>, vector<60x160xf32> -> vector<60x160xf32>
    %35 = vector.extract_strided_slice %34 {offsets = [0, 0], sizes = [36, 80], strides = [1, 1]} : vector<60x160xf32> to vector<36x80xf32>
    %36 = vector.shape_cast %35 : vector<36x80xf32> to vector<2x18x80xf32>
    %cst_26 = arith.constant dense<0xFF800000> : vector<2x80xf32>
    %37 = vector.multi_reduction <maximumf>, %36, %cst_26 [1] : vector<2x18x80xf32> to vector<2x80xf32>
    %38 = vector.extract_strided_slice %34 {offsets = [36, 80], sizes = [24, 80], strides = [1, 1]} : vector<60x160xf32> to vector<24x80xf32>
    %39 = vector.shape_cast %38 : vector<24x80xf32> to vector<2x12x80xf32>
    %cst_27 = arith.constant dense<0xFF800000> : vector<2x80xf32>
    %40 = vector.multi_reduction <maximumf>, %39, %cst_27 [1] : vector<2x12x80xf32> to vector<2x80xf32>
    %41 = tpu.concatenate %37, %40 in 1 : vector<2x80xf32>, vector<2x80xf32> -> vector<2x160xf32>
    %c0_28 = arith.constant 0 : index
    %c0_29 = arith.constant 0 : index
    %42 = vector.load %arg3[%c0_28, %c0_29] : memref<1x160xf32, #tpu.memory_space<vmem>>, vector<1x160xf32>
    %43 = vector.broadcast %42 : vector<1x160xf32> to vector<2x160xf32>
    %44 = arith.addf %41, %43 : vector<2x160xf32>
    %cst_30 = arith.constant 0.000000e+00 : f32
    %45 = vector.broadcast %cst_30 : f32 to vector<2x160xf32>
    %46 = arith.maximumf %44, %45 : vector<2x160xf32>
    %c0_31 = arith.constant 0 : index
    %c0_32 = arith.constant 0 : index
    %47 = vector.load %arg4[%c0_31, %c0_32] : memref<160x32xf32, #tpu.memory_space<vmem>>, vector<160x32xf32>
    %cst_33 = arith.constant dense<0.000000e+00> : vector<2x32xf32>
    %48 = tpu.matmul %46, %47, %cst_33 {dimension_numbers = #tpu.dot_dimension_numbers<[1], [0], [0], [1], [0, 0, 1, 1], [], []>} : vector<2x160xf32>, vector<160x32xf32>, vector<2x32xf32> -> vector<2x32xf32>
    %c0_34 = arith.constant 0 : index
    %c0_35 = arith.constant 0 : index
    %49 = vector.load %arg5[%c0_34, %c0_35] : memref<1x32xf32, #tpu.memory_space<vmem>>, vector<1x32xf32>
    %50 = vector.broadcast %49 : vector<1x32xf32> to vector<2x32xf32>
    %51 = arith.addf %48, %50 : vector<2x32xf32>
    %cst_36 = arith.constant 0.000000e+00 : f32
    %52 = vector.broadcast %cst_36 : f32 to vector<2x32xf32>
    %53 = arith.maximumf %51, %52 : vector<2x32xf32>
    %c0_37 = arith.constant 0 : index
    %c0_38 = arith.constant 0 : index
    %54 = vector.load %arg6[%c0_37, %c0_38] : memref<32x1xf32, #tpu.memory_space<vmem>>, vector<32x1xf32>
    %cst_39 = arith.constant dense<0.000000e+00> : vector<2x1xf32>
    %55 = tpu.matmul %53, %54, %cst_39 {dimension_numbers = #tpu.dot_dimension_numbers<[1], [0], [0], [1], [0, 0, 1, 1], [], []>} : vector<2x32xf32>, vector<32x1xf32>, vector<2x1xf32> -> vector<2x1xf32>
    %c0_40 = arith.constant 0 : index
    %c0_41 = arith.constant 0 : index
    %56 = vector.load %arg7[%c0_40, %c0_41] : memref<1x1xf32, #tpu.memory_space<vmem>>, vector<1x1xf32>
    %57 = vector.broadcast %56 : vector<1x1xf32> to vector<2x1xf32>
    %58 = arith.addf %55, %57 : vector<2x1xf32>
    %cst_42 = arith.constant 0.000000e+00 : f32
    %59 = vector.broadcast %cst_42 : f32 to vector<2x1xf32>
    %60 = arith.subf %59, %58 : vector<2x1xf32>
    %61 = math.exp %60 : vector<2x1xf32>
    %cst_43 = arith.constant 1.000000e+00 : f32
    %62 = vector.broadcast %cst_43 : f32 to vector<2x1xf32>
    %63 = arith.addf %62, %61 : vector<2x1xf32>
    %cst_44 = arith.constant 1.000000e+00 : f32
    %64 = vector.broadcast %cst_44 : f32 to vector<2x1xf32>
    %65 = arith.divf %64, %63 : vector<2x1xf32>
    %c0_45 = arith.constant 0 : index
    %c0_46 = arith.constant 0 : index
    %66 = vector.load %arg8[%c0_45, %c0_46] : memref<2x1xf32, #tpu.memory_space<vmem>>, vector<2x1xf32>
    tpu.vector_store %arg8[%c0_45, %c0_46], %65 {strides = array<i32>} : memref<2x1xf32, #tpu.memory_space<vmem>>, vector<2x1xf32>,
    return
  }
}

</mosaic_0001>

<bundles_post_ra>
// kernel: tpu_custom_call.1
= control target key start
LH: loop header
LB: loop body
LE: loop exit
PB: predicated region body
PF: predicated region fallthrough
CT: control target
= control target key end

     0   :  { %vm31_vm0 = vcmask 162816   ;;  %v1276_v0 = vmov 0.0   ;;  %vm35_vm1 = vcmask 156672   ;;  %vm2128_vm2 = vcmask 1044480   ;;  %s1277_s15 = smov 60   ;;  %s1278_s16 = smov 20   ;;  %s2119_s0 = inlined_call_operand.vmem [shape: f32[2,18,20], index: 0, kind: input, shape index: {}]   ;;  %s2120_s2 = inlined_call_operand.vmem [shape: f32[180,160], index: 2, kind: input, shape index: {}]   ;;  %s2121_s1 = inlined_call_operand.vmem [shape: f32[2,12,20], index: 1, kind: input, shape index: {}]   ;;  %s2122_s5 = inlined_call_operand.vmem [shape: f32[1,32], index: 5, kind: input, shape index: {}]   ;;  %s2123_s4 = inlined_call_operand.vmem [shape: f32[160,32], index: 4, kind: input, shape index: {}]   ;;  %s2124_s3 = inlined_call_operand.vmem [shape: f32[1,160], index: 3, kind: input, shape index: {}]   ;;  %s2125_s6 = inlined_call_operand.vmem [shape: f32[32,1], index: 6, kind: input, shape index: {}]   ;;  %s2126_s7 = inlined_call_operand.<no memory space> [shape: f32[1,1], index: 7, kind: input, shape index: {}]   ;;  %s2127_s8 = inlined_call_operand.vmem [shape: f32[2,1], index: 8, kind: output, shape index: {}]  }
   0x1   :  { %32 = vst.msk [vmem:[#allocation2] sm:$0xff] %vm31_vm0, %v1276_v0  ;;  %v41_v1 = vld [vmem:[%s2119_s0] sm:$0xff]  ;;  %v42_v2 = vld [vmem:[%s2119_s0 + $0x8] sm:$0xff]  ;;  %v43_v3 = vld [vmem:[%s2119_s0 + $0x10] sm:$0x3]  ;;  %vm2129_vm3 = vcmask 1046528  }
   0x2   :  { %33 = vst.msk [vmem:[#allocation2 + $0x8] sm:$0xff] %vm31_vm0, %v1276_v0  ;;  %vm243_vm4 = vcmask 1040384   ;;  %v44_v14 = vld [vmem:[%s2119_s0 + $0x18] sm:$0xff]  ;;  %v45_v15 = vld [vmem:[%s2119_s0 + $0x20] sm:$0xff]  ;;  %s1279_s17 = smov 12   ;;  %vm212_vm5 = vcmask 1041408  }
   0x3   :  { %34 = vst.msk [vmem:[#allocation2 + $0x10] sm:$0xff] %vm31_vm0, %v1276_v0  ;;  %vm96_vm6 = vcmask 1045504   ;;  %vm154_vm7 = vcmask 1043456   ;;  %s1280_s18 = smov 120   ;;  %s1281_s19 = smov 40   ;;  %vm183_vm8 = vcmask 1042432  }
   0x4   :  { %47 = vst.msk [vmem:[#allocation2 + $0x4] sm:$0xff] %vm31_vm0, %v41_v1  ;;  %s1282_s20 = smov 80   ;;  %s1283_s21 = smov 100   ;;  %v46_v56 = vld [vmem:[%s2119_s0 + $0x28] sm:$0x3]  ;;  %vm401_vm9 = vcmask 158720  }
   0x5   :  { %48 = vst.msk [vmem:[#allocation2 + $0xc] sm:$0xff] %vm31_vm0, %v42_v2  ;;  %s1284_s22 = smov 32   ;;  %vm300_vm10 = vcmask 326656   ;;  %vm307_vm11 = vcmask 490496   ;;  %vm335_vm12 = vcmask 97280   ;;  %vm314_vm13 = vcmask 654336  }
   0x6   :  { %37 = vst.msk [vmem:[#allocation2 + $0x20] sm:$0xff] %vm31_vm0, %v1276_v0  ;;  %vm321_vm14 = vcmask 818176   ;;  %vm328_vm15 = vcmask 982016  }
   0x7   :  { %38 = vst.msk [vmem:[#allocation2 + $0x28] sm:$0xff] %vm31_vm0, %v1276_v0 }
   0x8   :  { %39 = vst.msk [vmem:[#allocation2 + $0x30] sm:$0xff] %vm31_vm0, %v1276_v0 }
   0x9   :  { %399 = vst.msk [vmem:[#allocation3] sm:$0xff] %vm31_vm0, %v1276_v0 }
   0xa   :  { %400 = vst.msk [vmem:[#allocation3 + $0x8] sm:$0xff] %vm31_vm0, %v1276_v0 }
   0xb   :  { %v1357_v4 = vld [vmem:[#allocation2] sm:$0xff]  ;;  %403 = vst.msk [vmem:[#allocation3 + $0x18] sm:$0xff] %vm31_vm0, %v1276_v0 }
   0xc   :  { %v1361_v5 = vld [vmem:[#allocation2 + $0x8] sm:$0xff]  ;;  %v126_v6 = vrot.slane %v1357_v4, 3  ;;  %404 = vst.msk [vmem:[#allocation3 + $0x20] sm:$0xff] %vm31_vm0, %v1276_v0  ;;  %v68_v7 = vrot.slane %v1357_v4, 1  ;;  %v244_v10 = vrot.slane %v1357_v4, 7  ;;  %v213_v17 = vrot.slane %v1357_v4, 6 }
   0xd   :  { %v127_v8 = vrot.slane %v1361_v5, 3  ;;  %v69_v9 = vrot.slane %v1361_v5, 1  ;;  %49 = vst.msk [vmem:[#allocation2 + $0x14] sm:$0x3] %vm35_vm1, %v43_v3  ;;  %v245_v11 = vrot.slane %v1361_v5, 7  ;;  %v214_v18 = vrot.slane %v1361_v5, 6 }
   0xe   :  { %36 = vst.msk [vmem:[#allocation2 + $0x18] sm:$0x3] %vm35_vm1, %v1276_v0  ;;  %v97_v19 = vrot.slane %v1357_v4, 2  ;;  %v98_v20 = vrot.slane %v1361_v5, 2  ;;  %v155_v21 = vrot.slane %v1357_v4, 4  ;;  %v156_v22 = vrot.slane %v1361_v5, 4 }
   0xf   :  { %v128_v12 = vsel %vm2128_vm2, %v126_v6, %v127_v8  ;;  %v70_v13 = vsel %vm2129_vm3, %v68_v7, %v69_v9  ;;  %40 = vst.msk [vmem:[#allocation2 + $0x38] sm:$0x3] %vm35_vm1, %v1276_v0  ;;  %v246_v16 = vsel %vm243_vm4, %v244_v10, %v245_v11  ;;  %v215_v23 = vsel %vm212_vm5, %v213_v17, %v214_v18  ;;  %v724_v17 = vld [vmem:[%s2120_s2 + $0xe0] sm:$0xff] }
  0x10   :  { %136 = vrot.lane.b32.xlu1 %v128_v12, %s1277_s15  ;;  %78 = vrot.lane.b32.xlu0 %v70_v13, %s1278_s16  ;;  %50 = vst.msk [vmem:[#allocation2 + $0x24] sm:$0xff] %vm31_vm0, %v44_v14  ;;  %v99_v24 = vsel %vm96_vm6, %v97_v19, %v98_v20  ;;  %v157_v25 = vsel %vm154_vm7, %v155_v21, %v156_v22  ;;  %v184_v26 = vrot.slane %v1357_v4, 5  ;;  %v185_v27 = vrot.slane %v1361_v5, 5  ;;  %v726_v13 = vld [vmem:[%s2120_s2 + $0xf0] sm:$0xff]  ;;  %v727_v14 = vld [vmem:[%s2120_s2 + $0xf8] sm:$0xff] }
  0x11   :  { %258 = vrot.lane.b32.xlu2 %v246_v16, %s1279_s17  ;;  %51 = vst.msk [vmem:[#allocation2 + $0x2c] sm:$0xff] %vm31_vm0, %v45_v15  ;;  %766 = vmatpush.msra.mxu0 %v726_v13  ;;  %v722_v19 = vld [vmem:[%s2120_s2 + $0xd0] sm:$0xff] }
  0x12   :  { %v186_v30 = vsel %vm183_vm8, %v184_v26, %v185_v27  ;;  %52 = vst.msk [vmem:[#allocation2 + $0x34] sm:$0x3] %vm35_vm1, %v46_v56  ;;  %848 = vmatpush.msra.mxu2 %v727_v14  ;;  %v721_v26 = vld [vmem:[%s2120_s2 + $0xc8] sm:$0xff]  ;;  %v698_v13 = vld [vmem:[%s2120_s2 + $0x10] sm:$0xff]  ;;  %vm342_vm1 = vcmask 261120  }
  0x13   :  { %767 = vmatpush.msra.mxu0 %v724_v17  ;;  %402 = vst.msk [vmem:[#allocation3 + $0x10] sm:$0xf] %vm401_vm9, %v1276_v0  ;;  %v730_v14 = vld [vmem:[%s2120_s2 + $0x110] sm:$0xff] }
  0x14   :  { %v1404_v28 = vld [vmem:[#allocation2 + $0x10] sm:$0xff]  ;;  %405 = vst.msk [vmem:[#allocation3 + $0x28] sm:$0xf] %vm401_vm9, %v1276_v0 }
  0x15   :  { %v71_v29 = vrot.slane %v1404_v28, 1  ;;  %v129_v32 = vrot.slane %v1404_v28, 3  ;;  %v100_v33 = vrot.slane %v1404_v28, 2  ;;  %v216_v34 = vrot.slane %v1404_v28, 6  ;;  %v56_v6 = vld [vmem:[#allocation2 + $0x18] sm:$0x3]  ;;  %768 = vmatpush.msra.mxu0 %v722_v19 }
  0x16   :  { %v158_v38 = vrot.slane %v1404_v28, 4  ;;  %v247_v39 = vrot.slane %v1404_v28, 7  ;;  %v187_v46 = vrot.slane %v1404_v28, 5  ;;  %v696_v19 = vld [vmem:[%s2120_s2] sm:$0xff] }
  0x17   :  { %v72_v31 = vsel %vm2129_vm3, %v69_v9, %v71_v29  ;;  %v130_v35 = vsel %vm2128_vm2, %v127_v8, %v129_v32  ;;  %v101_v36 = vsel %vm96_vm6, %v98_v20, %v100_v33  ;;  %v217_v37 = vsel %vm212_vm5, %v214_v18, %v216_v34  ;;  %v1426_v42 = vld [vmem:[#allocation2 + $0x20] sm:$0xff]  ;;  %v723_v20 = vld [vmem:[%s2120_s2 + $0xd8] sm:$0xff] }
  0x18   :  { %223 = vrot.lane.b32.xlu1 %v215_v23, %s1280_s18  ;;  %107 = vrot.lane.b32.xlu0 %v99_v24, %s1281_s19  ;;  %v159_v40 = vsel %vm154_vm7, %v156_v22, %v158_v38  ;;  %v248_v41 = vsel %vm243_vm4, %v245_v11, %v247_v39  ;;  %v1428_v43 = vld [vmem:[#allocation2 + $0x28] sm:$0xff]  ;;  %v73_v44 = vrot.slane %v1426_v42, 1  ;;  %v102_v47 = vrot.slane %v1426_v42, 2  ;;  %v725_v18 = vld [vmem:[%s2120_s2 + $0xe8] sm:$0xff]  ;;  %v406_v22 = vld [vmem:[%s2121_s1] sm:$0xff] }
  0x19   :  { %165 = vrot.lane.b32.xlu2 %v157_v25, %s1282_s20  ;;  %v74_v45 = vrot.slane %v1428_v43, 1  ;;  %v103_v48 = vrot.slane %v1428_v43, 2  ;;  %v188_v50 = vsel %vm183_vm8, %v185_v27, %v187_v46  ;;  %v131_v52 = vrot.slane %v1426_v42, 3  ;;  %v1486_v10 = vld [vmem:[#allocation2 + $0x30] sm:$0xff]  ;;  %849 = vmatpush.msra.mxu2 %v725_v18  ;;  %v407_v23 = vld [vmem:[%s2121_s1 + $0x8] sm:$0xf] }
  0x1a   :  { %v132_v53 = vrot.slane %v1428_v43, 3  ;;  %v218_v54 = vrot.slane %v1426_v42, 6  ;;  %v219_v55 = vrot.slane %v1428_v43, 6  ;;  %v251_v59 = vrot.slane %v1426_v42, 7  ;;  %v720_v25 = vld [vmem:[%s2120_s2 + $0xc0] sm:$0xff]  ;;  %410 = vst.msk [vmem:[#allocation3 + $0x4] sm:$0xff] %vm31_vm0, %v406_v22 }
  0x1b   :  { %v75_v49 = vsel %vm2129_vm3, %v73_v44, %v74_v45  ;;  %v104_v51 = vsel %vm96_vm6, %v102_v47, %v103_v48  ;;  %v252_v60 = vrot.slane %v1428_v43, 7  ;;  %v160_v61 = vrot.slane %v1426_v42, 4  ;;  %850 = vmatpush.msra.mxu2 %v723_v20  ;;  %411 = vst.msk [vmem:[#allocation3 + $0xc] sm:$0xf] %vm401_vm9, %v407_v23  ;;  %v718_v27 = vld [vmem:[%s2120_s2 + $0xb0] sm:$0xff]  ;;  %769 = vmatpush.msra.mxu0 %v720_v25  ;;  %v711_v44 = vld [vmem:[%s2120_s2 + $0x78] sm:$0xff] }
  0x1c   :  { %v133_v57 = vsel %vm2128_vm2, %v131_v52, %v132_v53  ;;  %v220_v58 = vsel %vm212_vm5, %v218_v54, %v219_v55  ;;  %v161_v62 = vrot.slane %v1428_v43, 4  ;;  %v189_v2 = vrot.slane %v1426_v42, 5  ;;  %v708_v47 = vld [vmem:[%s2120_s2 + $0x60] sm:$0xff]  ;;  %v738_v52 = vld [vmem:[%s2120_s2 + $0x150] sm:$0xff]  ;;  %v697_v22 = vld [vmem:[%s2120_s2 + $0x8] sm:$0xff] }
  0x1d   :  { %v253_v63 = vsel %vm243_vm4, %v251_v59, %v252_v60  ;;  %v190_v3 = vrot.slane %v1428_v43, 5  ;;  %v249_v8 = vrot.slane %v56_v6, 7  ;;  %v76_v11 = vrot.slane %v1486_v10, 1  ;;  %851 = vmatpush.msra.mxu2 %v721_v26  ;;  %770 = vmatpush.msra.mxu0 %v718_v27  ;;  %v60_v54 = vld [vmem:[#allocation2 + $0x38] sm:$0x3]  ;;  %v705_v59 = vld [vmem:[%s2120_s2 + $0x48] sm:$0xff] }
  0x1e   :  { %v162_v1 = vsel %vm154_vm7, %v160_v61, %v161_v62  ;;  %v105_v15 = vrot.slane %v1486_v10, 2  ;;  %v134_v16 = vrot.slane %v1486_v10, 3  ;;  %v192_v56 = vrot.slane %v1486_v10, 5  ;;  %v737_v61 = vld [vmem:[%s2120_s2 + $0x148] sm:$0xff]  ;;  %v728_v20 = vld [vmem:[%s2120_s2 + $0x100] sm:$0xff] }
  0x1f   :  { %v191_v7 = vsel %vm183_vm8, %v189_v2, %v190_v3  ;;  %v250_v9 = vsel %vm243_vm4, %v247_v39, %v249_v8  ;;  %v77_v12 = vsel %vm2129_vm3, %v74_v45, %v76_v11  ;;  %v713_v39 = vld [vmem:[%s2120_s2 + $0x88] sm:$0xff]  ;;  %v703_v2 = vld [vmem:[%s2120_s2 + $0x38] sm:$0xff]  ;;  %v700_v8 = vld [vmem:[%s2120_s2 + $0x20] sm:$0xff] }
  0x20   :  { %194 = vrot.lane.b32.xlu1 %v186_v30, %s1283_s21  ;;  %276 = vrot.lane.b32.xlu0 %v1361_v5, %s1284_s22  ;;  %v106_v21 = vsel %vm96_vm6, %v103_v48, %v105_v15  ;;  %v135_v24 = vsel %vm2128_vm2, %v132_v53, %v134_v16  ;;  %v221_v30 = vrot.slane %v1486_v10, 6  ;;  %v740_v48 = vld [vmem:[%s2120_s2 + $0x160] sm:$0xf]  ;;  %v707_v53 = vld [vmem:[%s2120_s2 + $0x58] sm:$0xff] }
  0x21   :  { %80 = vrot.lane.b32.xlu2 %v72_v31, %s1278_s16  ;;  %v719_v31 = vld [vmem:[%s2120_s2 + $0xb8] sm:$0xff]  ;;  %1241 = vmatpush.msk.msra.mxu1 %vm154_vm7, %v740_v48  ;;  %v729_v23 = vld [vmem:[%s2120_s2 + $0x108] sm:$0xff] }
  0x22   :  { %852 = vmatpush.msra.mxu2 %v719_v31  ;;  %v1705_v25 = vld [vmem:[#allocation3 + $0x8] sm:$0xff] }
  0x23   :  { %817 = vmatpush.msra.mxu1 %v738_v52  ;;  %v443_v27 = vrot.slane %v1705_v25, 2 }
  0x28   :  { %138 = vrot.lane.b32.xlu1 %v130_v35, %s1277_s15  ;;  %109 = vrot.lane.b32.xlu0 %v101_v36, %s1281_s19  ;;  %v714_v35 = vld [vmem:[%s2120_s2 + $0x90] sm:$0xff]  ;;  %v222_v36 = vsel %vm212_vm5, %v219_v55, %v221_v30  ;;  %v739_v55 = vld [vmem:[%s2120_s2 + $0x158] sm:$0xff] }
  0x29   :  { %225 = vrot.lane.b32.xlu2 %v217_v37, %s1280_s18  ;;  %v715_v37 = vld [vmem:[%s2120_s2 + $0x98] sm:$0xff] }
  0x30   :  { %167 = vrot.lane.b32.xlu1 %v159_v40, %s1282_s20  ;;  %260 = vrot.lane.b32.xlu0 %v248_v41, %s1279_s17  ;;  %v163_v40 = vrot.slane %v1486_v10, 4  ;;  %v710_v41 = vld [vmem:[%s2120_s2 + $0x70] sm:$0xff] }
  0x31   :  { %278 = vrot.lane.b32.xlu2 %v1404_v28, %s1284_s22 }
  0x38   :  { %84 = vrot.lane.b32.xlu1 %v75_v49, %s1278_s16  ;;  %196 = vrot.lane.b32.xlu0 %v188_v50, %s1283_s21  ;;  %v709_v49 = vld [vmem:[%s2120_s2 + $0x68] sm:$0xff] }
  0x39   :  { %113 = vrot.lane.b32.xlu2 %v104_v51, %s1281_s19  ;;  %v741_v50 = vld [vmem:[%s2120_s2 + $0x168] sm:$0xf]  ;;  %v706_v51 = vld [vmem:[%s2120_s2 + $0x50] sm:$0xff] }
  0x3a   :  { %1250 = vmatpush.msk.msra.mxu3 %vm154_vm7, %v741_v50 }
  0x3c   :  { %895 = vmatpush.msra.mxu3 %v739_v55 }
  0x3e   :  { %896 = vmatpush.msra.mxu3 %v737_v61 }
  0x40   :  { %142 = vrot.lane.b32.xlu1 %v133_v57, %s1277_s15  ;;  %82 = vrot.lane.b32.xlu0 %v71_v29, %s1278_s16  ;;  %v254_v29 = vrot.slane %v1486_v10, 7  ;;  %v704_v57 = vld [vmem:[%s2120_s2 + $0x40] sm:$0xff] }
  0x41   :  { %229 = vrot.lane.b32.xlu2 %v220_v58, %s1280_s18  ;;  %v736_v58 = vld [vmem:[%s2120_s2 + $0x140] sm:$0xff] }
  0x42   :  { %v255_v0 = vsel %vm243_vm4, %v252_v60, %v254_v29  ;;  %v256_v60 = vrot.slane %v60_v54, 7  ;;  %818 = vmatpush.msra.mxu1 %v736_v58 }
  0x48   :  { %111 = vrot.lane.b32.xlu1 %v100_v33, %s1281_s19  ;;  %264 = vrot.lane.b32.xlu0 %v253_v63, %s1279_s17  ;;  %v716_v33 = vld [vmem:[%s2120_s2 + $0xa0] sm:$0xff]  ;;  %v702_v63 = vld [vmem:[%s2120_s2 + $0x30] sm:$0xff] }
  0x49   :  { %171 = vrot.lane.b32.xlu2 %v162_v1, %s1282_s20  ;;  %771 = vmatpush.msra.mxu0 %v716_v33  ;;  %v734_v1 = vld [vmem:[%s2120_s2 + $0x130] sm:$0xff] }
  0x4a   :  { %819 = vmatpush.msra.mxu1 %v734_v1 }
  0x4b   :  { %772 = vmatpush.msra.mxu0 %v714_v35  ;;  %v461_v35 = vrot.slane %v1705_v25, 3 }
  0x50   :  { %140 = vrot.lane.b32.xlu1 %v129_v32, %s1277_s15  ;;  %282 = vrot.lane.b32.xlu0 %v1428_v43, %s1284_s22 }
  0x51   :  { %200 = vrot.lane.b32.xlu2 %v191_v7, %s1283_s21  ;;  %v193_v7 = vsel %vm183_vm8, %v190_v3, %v192_v56  ;;  %v701_v3 = vld [vmem:[%s2120_s2 + $0x28] sm:$0xff] }
  0x58   :  { %262 = vrot.lane.b32.xlu1 %v250_v9, %s1279_s17  ;;  %227 = vrot.lane.b32.xlu0 %v216_v34, %s1280_s18  ;;  %v717_v34 = vld [vmem:[%s2120_s2 + $0xa8] sm:$0xff]  ;;  %v257_v9 = vsel %vm243_vm4, %v254_v29, %v256_v60 }
  0x59   :  { %169 = vrot.lane.b32.xlu2 %v158_v38, %s1282_s20  ;;  %853 = vmatpush.msra.mxu2 %v717_v34  ;;  %v712_v38 = vld [vmem:[%s2120_s2 + $0x80] sm:$0xff] }
  0x5a   :  { %773 = vmatpush.msra.mxu0 %v712_v38 }
  0x5b   :  { %854 = vmatpush.msra.mxu2 %v715_v37 }
  0x5c   :  { %774 = vmatpush.msra.mxu0 %v710_v41  ;;  %v408_v41 = vld [vmem:[%s2121_s1 + $0x10] sm:$0xff] }
  0x5d   :  { %855 = vmatpush.msra.mxu2 %v713_v39  ;;  %412 = vst.msk [vmem:[#allocation3 + $0x1c] sm:$0xff] %vm31_vm0, %v408_v41 }
  0x5e   :  { %775 = vmatpush.msra.mxu0 %v708_v47  ;;  %v543_v47 = vrot.slane %v1705_v25, 7 }
  0x5f   :  { %856 = vmatpush.msra.mxu2 %v711_v44  ;;  %v409_v44 = vld [vmem:[%s2121_s1 + $0x18] sm:$0xf] }
  0x60   :  { %198 = vrot.lane.b32.xlu1 %v187_v46, %s1283_s21  ;;  %280 = vrot.lane.b32.xlu0 %v56_v6, %s1284_s22  ;;  %v164_v46 = vsel %vm154_vm7, %v161_v62, %v163_v40  ;;  %v735_v6 = vld [vmem:[%s2120_s2 + $0x138] sm:$0xff]  ;;  %413 = vst.msk [vmem:[#allocation3 + $0x24] sm:$0xf] %vm401_vm9, %v409_v44  ;;  %vm742_vm9 = vcmask 424960  }
  0x61   :  { %86 = vrot.lane.b32.xlu2 %v77_v12, %s1278_s16  ;;  %857 = vmatpush.msra.mxu2 %v709_v49  ;;  %v733_v12 = vld [vmem:[%s2120_s2 + $0x128] sm:$0xff]  ;;  %v521_v49 = vrot.slane %v1705_v25, 6 }
  0x62   :  { %776 = vmatpush.msra.mxu0 %v706_v51  ;;  %897 = vmatpush.msra.mxu3 %v735_v6  ;;  %v479_v51 = vrot.slane %v1705_v25, 4 }
  0x63   :  { %858 = vmatpush.msra.mxu2 %v707_v53 }
  0x64   :  { %777 = vmatpush.msra.mxu0 %v704_v57  ;;  %898 = vmatpush.msra.mxu3 %v733_v12 }
  0x65   :  { %859 = vmatpush.msra.mxu2 %v705_v59 }
  0x66   :  { %778 = vmatpush.msra.mxu0 %v702_v63 }
  0x67   :  { %860 = vmatpush.msra.mxu2 %v703_v2 }
  0x68   :  { %88 = vrot.lane.b32.xlu1 %v76_v11, %s1278_s16  ;;  %115 = vrot.lane.b32.xlu0 %v106_v21, %s1281_s19  ;;  %v732_v11 = vld [vmem:[%s2120_s2 + $0x120] sm:$0xff] }
  0x69   :  { %144 = vrot.lane.b32.xlu2 %v135_v24, %s1277_s15  ;;  %779 = vmatpush.msra.mxu0 %v700_v8  ;;  %v1703_v24 = vld [vmem:[#allocation3] sm:$0xff] }
  0x6a   :  { %820 = vmatpush.msra.mxu1 %v732_v11  ;;  %861 = vmatpush.msra.mxu2 %v701_v3  ;;  %v442_v26 = vrot.slane %v1703_v24, 2  ;;  %v424_v29 = vrot.slane %v1703_v24, 1  ;;  %v460_v34 = vrot.slane %v1703_v24, 3  ;;  %v520_v48 = vrot.slane %v1703_v24, 6 }
  0x6b   :  { %v1546_v32 = vpop.permute.xlu2 %258  ;;  %780 = vmatpush.msra.mxu0 %v698_v13  ;;  %v478_v50 = vrot.slane %v1703_v24, 4  ;;  %v498_v11 = vrot.slane %v1703_v24, 5  ;;  %v499_v3 = vrot.slane %v1705_v25, 5 }
  0x6c   :  { %821 = vmatpush.msra.mxu1 %v730_v14  ;;  %v444_v38 = vsel %vm96_vm6, %v442_v26, %v443_v27  ;;  %v522_v61 = vsel %vm212_vm5, %v520_v48, %v521_v49 }
  0x6d   :  { %781 = vmatpush.msra.mxu0 %v696_v19 }
  0x6e   :  { %822 = vmatpush.msra.mxu1 %v728_v20 }
  0x70   :  { %266 = vrot.lane.b32.xlu1 %v255_v0, %s1279_s17  ;;  %231 = vrot.lane.b32.xlu0 %v222_v36, %s1280_s18 }
  0x71   :  { %117 = vrot.lane.b32.xlu2 %v105_v15, %s1281_s19  ;;  %v699_v15 = vld [vmem:[%s2120_s2 + $0x18] sm:$0xff] }
  0x72   :  { %862 = vmatpush.msra.mxu2 %v699_v15  ;;  %v500_v15 = vsel %vm183_vm8, %v498_v11, %v499_v3 }
  0x73   :  { %v1586_v45 = vpop.permute.xlu2 %165 }
  0x74   :  { %863 = vmatpush.msra.mxu2 %v697_v22 }
  0x78   :  { %284 = vrot.lane.b32.xlu1 %v1486_v10, %s1284_s22  ;;  %173 = vrot.lane.b32.xlu0 %v164_v46, %s1282_s20  ;;  %v542_v46 = vrot.slane %v1703_v24, 7 }
  0x79   :  { %146 = vrot.lane.b32.xlu2 %v134_v16, %s1277_s15  ;;  %v731_v16 = vld [vmem:[%s2120_s2 + $0x118] sm:$0xff] }
  0x7a   :  { %899 = vmatpush.msra.mxu3 %v731_v16  ;;  %v416_v16 = vld [vmem:[#allocation3 + $0x10] sm:$0xf] }
  0x7b   :  { %v1638_v62 = vpop.permute.xlu2 %80 }
  0x7c   :  { %900 = vmatpush.msra.mxu3 %v729_v23  ;;  %v295_v23 = vsel %vm31_vm0, %v1361_v5, %v1638_v62  ;;  %v545_v5 = vrot.slane %v416_v16, 7 }
  0x80   :  { %233 = vrot.lane.b32.xlu1 %v221_v30, %s1280_s18  ;;  %202 = vrot.lane.b32.xlu0 %v193_v7, %s1283_s21  ;;  %v425_v30 = vrot.slane %v1705_v25, 1 }
  0x81   :  { %268 = vrot.lane.b32.xlu2 %v257_v9, %s1279_s17 }
  0x82   :  { %v137_v17 = vpop.permute.xlu1 %136  ;;  %v79_v18 = vpop.permute.xlu0 %78  ;;  %v426_v39 = vsel %vm2129_vm3, %v424_v29, %v425_v30  ;;  %vm2130_vm3 = vcmask 1045508  }
  0x83   :  { %v1695_v21 = vpop.permute.xlu2 %225  ;;  %v294_v0 = vsel %vm31_vm0, %v1357_v4, %v79_v18 }
  0x88   :  { %286 = vrot.lane.b32.xlu1 %v60_v54, %s1284_s22  ;;  %175 = vrot.lane.b32.xlu0 %v163_v40, %s1282_s20  ;;  %v462_v40 = vsel %vm2128_vm2, %v460_v34, %v461_v35  ;;  %vm368_vm2 = vcmask 1043458  }
  0x89   :  { %204 = vrot.lane.b32.xlu2 %v192_v56, %s1283_s21 }
  0x8a   :  { %v224_v31 = vpop.permute.xlu1 %223  ;;  %v108_v33 = vpop.permute.xlu0 %107 }
  0x8b   :  { %v1722_v36 = vpop.permute.xlu2 %278  ;;  %v301_v37 = vsel %vm300_vm10, %v294_v0, %v108_v33  ;;  %v336_v52 = vsel %vm335_vm12, %v224_v31, %v1546_v32  ;;  %v544_v32 = vsel %vm243_vm4, %v542_v46, %v543_v47  ;;  %v1822_v46 = vld [vmem:[#allocation3 + $0x18] sm:$0xff] }
  0x8c   :  { %v308_v4 = vsel %vm307_vm11, %v301_v37, %v137_v17  ;;  %v523_v17 = vrot.slane %v416_v16, 6 }
  0x8d   :  { %v315_v54 = vsel %vm314_vm13, %v308_v4, %v1586_v45  ;;  %v480_v45 = vsel %vm154_vm7, %v478_v50, %v479_v51 }
  0x90   :  { %448 = vrot.lane.b32.xlu1 %v444_v38, %s1281_s19  ;;  %430 = vrot.lane.b32.xlu0 %v426_v39, %s1278_s16 }
  0x91   :  { %466 = vrot.lane.b32.xlu2 %v462_v40, %s1277_s15 }
  0x92   :  { %v195_v53 = vpop.permute.xlu1 %194  ;;  %v277_v55 = vpop.permute.xlu0 %276 }
  0x93   :  { %v322_v56 = vsel %vm321_vm14, %v315_v54, %v195_v53  ;;  %v343_v57 = vsel %vm342_vm1, %v336_v52, %v277_v55  ;;  %v1758_v58 = vpop.permute.xlu2 %113  ;;  %v1824_v52 = vld [vmem:[#allocation3 + $0x20] sm:$0xff]  ;;  %v501_v53 = vrot.slane %v416_v16, 5 }
  0x94   :  { %v329_v59 = vsel %vm328_vm15, %v322_v56, %v224_v31  ;;  %v361_v60 = vrot.slane %v343_v57, 6  ;;  %v524_v31 = vsel %vm212_vm5, %v521_v49, %v523_v17  ;;  %v445_v56 = vrot.slane %v1822_v46, 2 }
  0x95   :  { %v446_v57 = vrot.slane %v1824_v52, 2  ;;  %v548_v11 = vrot.slane %v1824_v52, 7 }
  0x96   :  { %v367_v63 = vsel %vm212_vm5, %v329_v59, %v361_v60  ;;  %v369_v1 = vsel %vm368_vm2, %v329_v59, %v361_v60  ;;  %v372_v2 = vsel %vm2130_vm3, %v329_v59, %v361_v60  ;;  %v374_v6 = vsel %vm96_vm6, %v361_v60, %v329_v59 }
  0x97   :  { %v370_v7 = vrot.slane %v369_v1, 2  ;;  %v373_v8 = vrot.slane %v372_v2, 4  ;;  %v375_v9 = vrot.slane %v374_v6, 6  ;;  %628 = vst [vmem:[#allocation1] ss:$4 sm:$0xff] %v367_v63  ;;  %v502_v60 = vsel %vm183_vm8, %v499_v3, %v501_v53 }
  0x98   :  { %552 = vrot.lane.b32.xlu1 %v544_v32, %s1279_s17  ;;  %530 = vrot.lane.b32.xlu0 %v522_v61, %s1280_s18  ;;  %v447_v32 = vsel %vm96_vm6, %v445_v56, %v446_v57  ;;  %v525_v61 = vrot.slane %v1822_v46, 6  ;;  %v526_v63 = vrot.slane %v1824_v52, 6  ;;  %v463_v1 = vrot.slane %v1822_v46, 3 }
  0x99   :  { %630 = vst [vmem:[#allocation1 + $0x1] ss:$4 sm:$0xff] %v370_v7  ;;  %484 = vrot.lane.b32.xlu2 %v480_v45, %s1282_s20  ;;  %v464_v2 = vrot.slane %v1824_v52, 3 }
  0x9a   :  { %632 = vst [vmem:[#allocation1 + $0x2] ss:$4 sm:$0xff] %v373_v8  ;;  %v139_v12 = vpop.permute.xlu1 %138  ;;  %v110_v13 = vpop.permute.xlu0 %109 }
  0x9b   :  { %634 = vst [vmem:[#allocation1 + $0x3] ss:$4 sm:$0xff] %v375_v9  ;;  %v1777_v14 = vpop.permute.xlu2 %229 }
  0xa0   :  { %508 = vrot.lane.b32.xlu1 %v500_v15, %s1283_s21  ;;  %564 = vrot.lane.b32.xlu0 %v1705_v25, %s1284_s22  ;;  %v527_v15 = vsel %vm212_vm5, %v525_v61, %v526_v63 }
  0xa1   :  { %432 = vrot.lane.b32.xlu2 %v425_v30, %s1278_s16  ;;  %v302_v30 = vsel %vm300_vm10, %v295_v23, %v110_v13 }
  0xa2   :  { %v643_v18 = vld.sshfl [vmem:[#allocation1] sm:$0xff pattern:$0x73625140]  ;;  %v644_v19 = vld.sshfl [vmem:[#allocation1 + $0x8] sm:$0xff pattern:$0x73625140]  ;;  %v168_v20 = vpop.permute.xlu1 %167  ;;  %v261_v22 = vpop.permute.xlu0 %260  ;;  %v309_v62 = vsel %vm307_vm11, %v302_v30, %v139_v12 }
  0xa3   :  { %782 = vmatmul.f32.vlgmr.msra.gmra.mxu0 %v643_v18  ;;  %1242 = vmatmul.msk.f32.vlgmr.msra.gmra.mxu1 %vm742_vm9, %v644_v19  ;;  %v1792_v26 = vpop.permute.xlu2 %171  ;;  %v337_v29 = vsel %vm335_vm12, %v1695_v21, %v261_v22  ;;  %v316_v34 = vsel %vm314_vm13, %v309_v62, %v168_v20  ;;  %v503_v20 = vrot.slane %v1822_v46, 5  ;;  %v504_v22 = vrot.slane %v1824_v52, 5 }
  0xa4   :  { %864 = vmatmul.f32.vlgmr.msra.gmra.mxu2 %v643_v18  ;;  %1251 = vmatmul.msk.f32.vlgmr.msra.gmra.mxu3 %vm742_vm9, %v644_v19  ;;  %v344_v33 = vsel %vm342_vm1, %v337_v29, %v1722_v36  ;;  %v482_v19 = vrot.slane %v1824_v52, 4 }
  0xa5   :  { %v362_v38 = vrot.slane %v344_v33, 6 }
  0xa8   :  { %468 = vrot.lane.b32.xlu1 %v461_v35, %s1277_s15  ;;  %450 = vrot.lane.b32.xlu0 %v443_v27, %s1281_s19  ;;  %v546_v27 = vsel %vm243_vm4, %v543_v47, %v545_v5  ;;  %v428_v47 = vrot.slane %v1824_v52, 1 }
  0xa9   :  { %532 = vrot.lane.b32.xlu2 %v524_v31, %s1280_s18 }
  0xaa   :  { %v85_v0 = vpop.permute.xlu1 %84  ;;  %v197_v37 = vpop.permute.xlu0 %196 }
  0xab   :  { %v323_v36 = vsel %vm321_vm14, %v316_v34, %v197_v37  ;;  %v1811_v39 = vpop.permute.xlu2 %200  ;;  %v297_v45 = vsel %vm31_vm0, %v1426_v42, %v85_v0  ;;  %v547_v42 = vrot.slane %v1822_v46, 7  ;;  %v505_v0 = vsel %vm183_vm8, %v503_v20, %v504_v22 }
  0xac   :  { %v330_v35 = vsel %vm328_vm15, %v323_v36, %v1695_v21  ;;  %v427_v21 = vrot.slane %v1822_v46, 1  ;;  %v304_v3 = vsel %vm300_vm10, %v297_v45, %v1758_v58  ;;  %v481_v58 = vrot.slane %v1822_v46, 4 }
  0xad   :  { %v376_v40 = vsel %vm212_vm5, %v330_v35, %v362_v38  ;;  %v377_v4 = vsel %vm368_vm2, %v330_v35, %v362_v38  ;;  %v379_v41 = vsel %vm2130_vm3, %v330_v35, %v362_v38  ;;  %v381_v44 = vsel %vm96_vm6, %v362_v38, %v330_v35 }
  0xae   :  { %v378_v48 = vrot.slane %v377_v4, 2  ;;  %v380_v49 = vrot.slane %v379_v41, 4  ;;  %v382_v50 = vrot.slane %v381_v44, 6  ;;  %636 = vst [vmem:[#allocation1 + $0x20] ss:$4 sm:$0xff] %v376_v40  ;;  %vm2131_vm3 = vcmask 1046528  }
  0xaf   :  { %v549_v17 = vsel %vm243_vm4, %v547_v42, %v548_v11  ;;  %v483_v34 = vsel %vm154_vm7, %v481_v58, %v482_v19 }
  0xb0   :  { %638 = vst [vmem:[#allocation1 + $0x21] ss:$4 sm:$0xff] %v378_v48  ;;  %486 = vrot.lane.b32.xlu1 %v479_v51, %s1282_s20  ;;  %554 = vrot.lane.b32.xlu0 %v546_v27, %s1279_s17  ;;  %v429_v51 = vsel %vm2131_vm3, %v427_v21, %v428_v47  ;;  %vm2132_vm3 = vcmask 1044480  }
  0xb1   :  { %640 = vst [vmem:[#allocation1 + $0x22] ss:$4 sm:$0xff] %v380_v49  ;;  %566 = vrot.lane.b32.xlu2 %v416_v16, %s1284_s22  ;;  %v465_v16 = vsel %vm2132_vm3, %v463_v1, %v464_v2  ;;  %vm2133_vm3 = vcmask 1045508   ;;  %v419_v49 = vld [vmem:[#allocation3 + $0x28] sm:$0xf] }
  0xb2   :  { %642 = vst [vmem:[#allocation1 + $0x23] ss:$4 sm:$0xff] %v382_v50  ;;  %v143_v54 = vpop.permute.xlu1 %142  ;;  %v1833_v55 = vpop.permute.xlu0 %82  ;;  %v550_v21 = vrot.slane %v419_v49, 7  ;;  %v528_v53 = vrot.slane %v419_v49, 6 }
  0xb3   :  { %v1837_v59 = vpop.permute.xlu2 %169  ;;  %v311_v13 = vsel %vm307_vm11, %v304_v3, %v143_v54  ;;  %v296_v41 = vsel %vm31_vm0, %v1404_v28, %v1833_v55 }
  0xb4   :  { %v318_v18 = vsel %vm314_vm13, %v311_v13, %v1792_v26  ;;  %v529_v61 = vsel %vm212_vm5, %v526_v63, %v528_v53 }
  0xb5   :  { %v325_v23 = vsel %vm321_vm14, %v318_v18, %v1811_v39 }
  0xb6   :  { %v332_v62 = vsel %vm328_vm15, %v325_v23, %v1777_v14 }
  0xb8   :  { %434 = vrot.lane.b32.xlu1 %v429_v51, %s1278_s16  ;;  %510 = vrot.lane.b32.xlu0 %v502_v60, %s1283_s21 }
  0xb9   :  { %v645_v6 = vld.sshfl [vmem:[#allocation1 + $0x20] sm:$0xff pattern:$0x73625140]  ;;  %v646_v7 = vld.sshfl [vmem:[#allocation1 + $0x28] sm:$0xff pattern:$0x73625140]  ;;  %452 = vrot.lane.b32.xlu2 %v447_v32, %s1281_s19 }
  0xba   :  { %785 = vmatmul.f32.gmra.mxu0 %v645_v6  ;;  %1243 = vmatmul.msk.f32.gmra.mxu1 %vm742_vm9, %v646_v7  ;;  %v112_v8 = vpop.permute.xlu1 %111  ;;  %v265_v9 = vpop.permute.xlu0 %264 }
  0xbb   :  { %866 = vmatmul.f32.gmra.mxu2 %v645_v6  ;;  %1252 = vmatmul.msk.f32.gmra.mxu3 %vm742_vm9, %v646_v7  ;;  %v1863_v12 = vpop.permute.xlu2 %86  ;;  %v339_v26 = vsel %vm335_vm12, %v1777_v14, %v265_v9  ;;  %v303_v48 = vsel %vm300_vm10, %v296_v41, %v112_v8  ;;  %v506_v6 = vrot.slane %v419_v49, 5 }
  0xbd   :  { %v507_v9 = vsel %vm183_vm8, %v504_v22, %v506_v6 }
  0xc0   :  { %534 = vrot.lane.b32.xlu1 %v527_v15, %s1280_s18  ;;  %470 = vrot.lane.b32.xlu0 %v465_v16, %s1277_s15  ;;  %v298_v16 = vsel %vm31_vm0, %v1428_v43, %v1863_v12 }
  0xc1   :  { %556 = vrot.lane.b32.xlu2 %v549_v17, %s1279_s17 }
  0xc2   :  { %v141_v29 = vpop.permute.xlu1 %140  ;;  %v283_v30 = vpop.permute.xlu0 %282 }
  0xc3   :  { %v346_v31 = vsel %vm342_vm1, %v339_v26, %v283_v30  ;;  %v1885_v33 = vpop.permute.xlu2 %144  ;;  %v310_v50 = vsel %vm307_vm11, %v303_v48, %v141_v29 }
  0xc4   :  { %v364_v5 = vrot.slane %v346_v31, 6  ;;  %v317_v55 = vsel %vm314_vm13, %v310_v50, %v1837_v59 }
  0xc6   :  { %v384_v37 = vsel %vm212_vm5, %v332_v62, %v364_v5  ;;  %v385_v38 = vsel %vm368_vm2, %v332_v62, %v364_v5  ;;  %v387_v36 = vsel %vm2133_vm3, %v332_v62, %v364_v5  ;;  %v389_v39 = vsel %vm96_vm6, %v364_v5, %v332_v62 }
  0xc7   :  { %v386_v35 = vrot.slane %v385_v38, 2  ;;  %v388_v27 = vrot.slane %v387_v36, 4  ;;  %v390_v40 = vrot.slane %v389_v39, 6  ;;  %648 = vst [vmem:[#allocation1 + $0x1] ss:$4 sm:$0xff] %v384_v37 }
  0xc8   :  { %568 = vrot.lane.b32.xlu1 %v1824_v52, %s1284_s22  ;;  %488 = vrot.lane.b32.xlu0 %v483_v34, %s1282_s20 }
  0xc9   :  { %649 = vst [vmem:[#allocation1 + $0x2] ss:$4 sm:$0xff] %v386_v35  ;;  %512 = vrot.lane.b32.xlu2 %v505_v0, %s1283_s21 }
  0xca   :  { %650 = vst [vmem:[#allocation1 + $0x3] ss:$4 sm:$0xff] %v388_v27  ;;  %v263_v14 = vpop.permute.xlu1 %262  ;;  %v228_v4 = vpop.permute.xlu0 %227 }
  0xcb   :  { %651 = vst [vmem:[#allocation1 + $0x20] ss:$4 sm:$0xff] %v390_v40  ;;  %v1902_v44 = vpop.permute.xlu2 %117  ;;  %v338_v28 = vsel %vm335_vm12, %v228_v4, %v263_v14 }
  0xd0   :  { %454 = vrot.lane.b32.xlu1 %v446_v57, %s1281_s19  ;;  %436 = vrot.lane.b32.xlu0 %v428_v47, %s1278_s16  ;;  %v551_v47 = vsel %vm243_vm4, %v548_v11, %v550_v21  ;;  %vm2134_vm4 = vmmov %vm2133_vm3 }
  0xd1   :  { %472 = vrot.lane.b32.xlu2 %v464_v2, %s1277_s15 }
  0xd2   :  { %v199_v54 = vpop.permute.xlu1 %198  ;;  %v281_v56 = vpop.permute.xlu0 %280 }
  0xd3   :  { %v324_v51 = vsel %vm321_vm14, %v317_v55, %v199_v54  ;;  %v345_v60 = vsel %vm342_vm1, %v338_v28, %v281_v56  ;;  %v147_v1 = vpop.permute.xlu2 %146 }
  0xd4   :  { %v331_v57 = vsel %vm328_vm15, %v324_v51, %v228_v4  ;;  %v363_v32 = vrot.slane %v345_v60, 6 }
  0xd6   :  { %v383_v45 = vsel %vm212_vm5, %v331_v57, %v363_v32 }
  0xd7   :  { %647 = vst [vmem:[#allocation1] ss:$4 sm:$0xff] %v383_v45 }
  0xd8   :  { %558 = vrot.lane.b32.xlu1 %v551_v47, %s1279_s17  ;;  %536 = vrot.lane.b32.xlu0 %v529_v61, %s1280_s18 }
  0xd9   :  { %490 = vrot.lane.b32.xlu2 %v482_v19, %s1282_s20 }
  0xda   :  { %v89_v59 = vpop.permute.xlu1 %88  ;;  %v116_v2 = vpop.permute.xlu0 %115 }
  0xdb   :  { %v269_v63 = vpop.permute.xlu2 %268  ;;  %v305_v17 = vsel %vm300_vm10, %v298_v16, %v116_v2  ;;  %v299_v43 = vsel %vm31_vm0, %v1486_v10, %v89_v59 }
  0xdc   :  { %v312_v19 = vsel %vm307_vm11, %v305_v17, %v1885_v33  ;;  %v306_v38 = vsel %vm300_vm10, %v299_v43, %v1902_v44 }
  0xdd   :  { %v313_v10 = vsel %vm307_vm11, %v306_v38, %v147_v1 }
  0xde   :  { %v655_v7 = vld.sshfl [vmem:[#allocation1] sm:$0xff pattern:$0x73625140]  ;;  %v656_v8 = vld.sshfl [vmem:[#allocation1 + $0x8] sm:$0xff pattern:$0x73625140] }
  0xdf   :  { %788 = vmatmul.f32.gmra.mxu0 %v655_v7  ;;  %1244 = vmatmul.msk.f32.gmra.mxu1 %vm742_vm9, %v656_v8 }
  0xe0   :  { %868 = vmatmul.f32.gmra.mxu2 %v655_v7  ;;  %1253 = vmatmul.msk.f32.gmra.mxu3 %vm742_vm9, %v656_v8 }
  0xe1   :  { %514 = vrot.lane.b32.xlu1 %v507_v9, %s1283_s21  ;;  %570 = vrot.lane.b32.xlu0 %v419_v49, %s1284_s22 }
  0xe2   :  { %v267_v42 = vpop.permute.xlu1 %266  ;;  %v232_v11 = vpop.permute.xlu0 %231 }
  0xe3   :  { %v205_v3 = vpop.permute.xlu2 %204  ;;  %v340_v18 = vsel %vm335_vm12, %v232_v11, %v267_v42 }
  0xea   :  { %v285_v13 = vpop.permute.xlu1 %284  ;;  %v174_v15 = vpop.permute.xlu0 %173 }
  0xeb   :  { %v347_v58 = vsel %vm342_vm1, %v340_v18, %v285_v13  ;;  %v319_v20 = vsel %vm314_vm13, %v312_v19, %v174_v15  ;;  %v467_v30 = vpop.permute.xlu2 %466 }
  0xec   :  { %v365_v26 = vrot.slane %v347_v58, 6 }
  0xf2   :  { %v234_v22 = vpop.permute.xlu1 %233  ;;  %v203_v23 = vpop.permute.xlu0 %202 }
  0xf3   :  { %v326_v29 = vsel %vm321_vm14, %v319_v20, %v203_v23  ;;  %v341_v36 = vsel %vm335_vm12, %v234_v22, %v269_v63  ;;  %v485_v48 = vpop.permute.xlu2 %484 }
  0xf4   :  { %v333_v12 = vsel %vm328_vm15, %v326_v29, %v232_v11 }
  0xf5   :  { %v391_v31 = vsel %vm212_vm5, %v333_v12, %v365_v26  ;;  %v392_v5 = vsel %vm368_vm2, %v333_v12, %v365_v26  ;;  %v394_v62 = vsel %vm2134_vm4, %v333_v12, %v365_v26  ;;  %v396_v33 = vsel %vm96_vm6, %v365_v26, %v333_v12 }
  0xf6   :  { %v393_v34 = vrot.slane %v392_v5, 2  ;;  %v395_v0 = vrot.slane %v394_v62, 4  ;;  %v397_v37 = vrot.slane %v396_v33, 6  ;;  %652 = vst [vmem:[#allocation1 + $0x21] ss:$4 sm:$0xff] %v391_v31  ;;  %vm1095_vm2 = vcmask 1041409  }
  0xf7   :  { %vm1054_vm6 = vcmask 1048192  }
  0xf8   :  { %653 = vst [vmem:[#allocation1 + $0x22] ss:$4 sm:$0xff] %v393_v34 }
  0xf9   :  { %654 = vst [vmem:[#allocation1 + $0x23] ss:$4 sm:$0xff] %v395_v0 }
  0xfa   :  { %659 = vst [vmem:[#allocation1] ss:$4 sm:$0xff] %v397_v37  ;;  %v287_v39 = vpop.permute.xlu1 %286  ;;  %v176_v35 = vpop.permute.xlu0 %175 }
  0xfb   :  { %v348_v27 = vsel %vm342_vm1, %v341_v36, %v287_v39  ;;  %v320_v40 = vsel %vm314_vm13, %v313_v10, %v176_v35  ;;  %v433_v28 = vpop.permute.xlu2 %432 }
  0xfc   :  { %v366_v14 = vrot.slane %v348_v27, 6  ;;  %v327_v4 = vsel %vm321_vm14, %v320_v40, %v205_v3  ;;  %v577_v19 = vsel %vm31_vm0, %v1705_v25, %v433_v28 }
  0xfd   :  { %v334_v41 = vsel %vm328_vm15, %v327_v4, %v234_v22 }
  0xfe   :  { %v398_v44 = vsel %vm212_vm5, %v334_v41, %v366_v14  ;;  %vm1066_vm5 = vcmask 257024  }
  0xff   :  { %660 = vst [vmem:[#allocation1 + $0x1] ss:$4 sm:$0xff] %v398_v44 }
 0x100   :  { %v657_v49 = vld.sshfl [vmem:[#allocation1 + $0x20] sm:$0xff pattern:$0x73625140]  ;;  %v658_v50 = vld.sshfl [vmem:[#allocation1 + $0x28] sm:$0xff pattern:$0x73625140] }
 0x101   :  { %791 = vmatmul.f32.gmra.mxu0 %v657_v49  ;;  %1245 = vmatmul.msk.f32.gmra.mxu1 %vm742_vm9, %v658_v50 }
 0x102   :  { %870 = vmatmul.f32.gmra.mxu2 %v657_v49  ;;  %1254 = vmatmul.msk.f32.gmra.mxu3 %vm742_vm9, %v658_v50  ;;  %v449_v21 = vpop.permute.xlu1 %448  ;;  %v431_v53 = vpop.permute.xlu0 %430 }
 0x103   :  { %v576_v54 = vsel %vm31_vm0, %v1703_v24, %v431_v53  ;;  %v533_v57 = vpop.permute.xlu2 %532 }
 0x104   :  { %v580_v51 = vsel %vm300_vm10, %v576_v54, %v449_v21 }
 0x105   :  { %v584_v60 = vsel %vm307_vm11, %v580_v51, %v467_v30 }
 0x106   :  { %v588_v32 = vsel %vm314_vm13, %v584_v60, %v485_v48  ;;  %v661_v6 = vld.sshfl [vmem:[#allocation1] sm:$0xff pattern:$0x73625140]  ;;  %v662_v7 = vld.sshfl [vmem:[#allocation1 + $0x8] sm:$0xff pattern:$0x73625140] }
 0x10a   :  { %v553_v55 = vpop.permute.xlu1 %552  ;;  %v531_v56 = vpop.permute.xlu0 %530 }
 0x10b   :  { %v600_v47 = vsel %vm335_vm12, %v531_v56, %v553_v55  ;;  %v567_v3 = vpop.permute.xlu2 %566 }
 0x112   :  { %v509_v61 = vpop.permute.xlu1 %508  ;;  %v565_v45 = vpop.permute.xlu0 %564 }
 0x113   :  { %v592_v1 = vsel %vm321_vm14, %v588_v32, %v509_v61  ;;  %v604_v59 = vsel %vm342_vm1, %v600_v47, %v565_v45  ;;  %v453_v23 = vpop.permute.xlu2 %452 }
 0x114   :  { %v596_v2 = vsel %vm328_vm15, %v592_v1, %v531_v56  ;;  %v616_v24 = vrot.slane %v604_v59, 4 }
 0x116   :  { %v620_v8 = vsel %vm154_vm7, %v596_v2, %v616_v24  ;;  %v621_v9 = vsel %vm154_vm7, %v616_v24, %v596_v2 }
 0x117   :  { %v622_v63 = vrot.slane %v621_v9, 4  ;;  %670 = vst [vmem:[#allocation1 + $0x1] ss:$2 sm:$0xff] %v620_v8 }
 0x119   :  { %672 = vst [vmem:[#allocation1 + $0x10] ss:$2 sm:$0xff] %v622_v63 }
 0x11a   :  { %v469_v42 = vpop.permute.xlu1 %468  ;;  %v451_v11 = vpop.permute.xlu0 %450 }
 0x11b   :  { %v581_v22 = vsel %vm300_vm10, %v577_v19, %v451_v11  ;;  %v557_v10 = vpop.permute.xlu2 %556 }
 0x11c   :  { %v585_v43 = vsel %vm307_vm11, %v581_v22, %v469_v42 }
 0x11e   :  { %v681_v13 = vld.sshfl [vmem:[#allocation1] sm:$0xff pattern:$0x75316420]  ;;  %v682_v15 = vld.sshfl [vmem:[#allocation1 + $0x8] sm:$0xff pattern:$0x75316420] }
 0x11f   :  { %v694_v16 = vsel %vm154_vm7, %v661_v6, %v681_v13  ;;  %v695_v17 = vsel %vm154_vm7, %v662_v7, %v682_v15 }
 0x120   :  { %794 = vmatmul.f32.gmra.mxu0 %v694_v16  ;;  %1246 = vmatmul.msk.f32.gmra.mxu1 %vm742_vm9, %v695_v17  ;;  %v783_v34 = vpop.f32.mrf.mxu0  ;;  %v824_v0 = vpop.f32.mrf.mxu1 }
 0x121   :  { %872 = vmatmul.f32.gmra.mxu2 %v694_v16  ;;  %1255 = vmatmul.msk.f32.gmra.mxu3 %vm742_vm9, %v695_v17  ;;  %v825_v38 = vadd.f32 %v824_v0, %v783_v34 }
 0x122   :  { %v487_v18 = vpop.permute.xlu1 %486  ;;  %v555_v58 = vpop.permute.xlu0 %554 }
 0x123   :  { %v601_v20 = vsel %vm335_vm12, %v533_v57, %v555_v58  ;;  %v589_v12 = vsel %vm314_vm13, %v585_v43, %v487_v18  ;;  %v927_v35 = vrot.slane %v825_v38, 2  ;;  %v929_v14 = vrot.slane %v825_v38, 6 }
 0x124   :  { %v605_v30 = vsel %vm342_vm1, %v601_v20, %v567_v3  ;;  %v928_v41 = vrot.slane %v825_v38, 4 }
 0x125   :  { %v617_v62 = vrot.slane %v605_v30, 4 }
 0x127   :  { %v865_v26 = vpop.f32.mrf.mxu2  ;;  %v902_v29 = vpop.f32.mrf.mxu3 }
 0x12a   :  { %v435_v31 = vpop.permute.xlu1 %434  ;;  %v511_v5 = vpop.permute.xlu0 %510 }
 0x12b   :  { %v593_v33 = vsel %vm321_vm14, %v589_v12, %v511_v5  ;;  %v578_v4 = vsel %vm31_vm0, %v1822_v46, %v435_v31  ;;  %v513_v46 = vpop.permute.xlu2 %512 }
 0x12c   :  { %v597_v25 = vsel %vm328_vm15, %v593_v33, %v533_v57  ;;  %v582_v48 = vsel %vm300_vm10, %v578_v4, %v453_v23 }
 0x12d   :  { %v623_v37 = vsel %vm154_vm7, %v597_v25, %v617_v62 }
 0x12e   :  { %674 = vst [vmem:[#allocation1 + $0x11] ss:$2 sm:$0xff] %v623_v37 }
 0x132   :  { %v535_v36 = vpop.permute.xlu1 %534  ;;  %v471_v39 = vpop.permute.xlu0 %470 }
 0x133   :  { %v602_v44 = vsel %vm335_vm12, %v535_v36, %v557_v10  ;;  %v586_v49 = vsel %vm307_vm11, %v582_v48, %v471_v39  ;;  %v473_v1 = vpop.permute.xlu2 %472 }
 0x135   :  { %v683_v27 = vld.sshfl [vmem:[#allocation1 + $0x10] sm:$0xff pattern:$0x75316420]  ;;  %v684_v40 = vld.sshfl [vmem:[#allocation1 + $0x18] sm:$0xff pattern:$0x75316420] }
 0x136   :  { %940 = vst [vmem:[#allocation1] ss:$4 sm:$0xff] %v825_v38  ;;  %797 = vmatmul.f32.gmra.mxu0 %v683_v27  ;;  %1247 = vmatmul.msk.f32.gmra.mxu1 %vm742_vm9, %v684_v40 }
 0x137   :  { %942 = vst [vmem:[#allocation1 + $0x1] ss:$4 sm:$0xff] %v927_v35  ;;  %875 = vmatmul.f32.gmra.mxu2 %v683_v27  ;;  %1256 = vmatmul.msk.f32.gmra.mxu3 %vm742_vm9, %v684_v40  ;;  %v786_v16 = vpop.f32.mrf.mxu0  ;;  %v827_v17 = vpop.f32.mrf.mxu1 }
 0x138   :  { %946 = vst [vmem:[#allocation1 + $0x3] ss:$4 sm:$0xff] %v929_v14  ;;  %v828_v20 = vadd.f32 %v827_v17, %v786_v16 }
 0x139   :  { %944 = vst [vmem:[#allocation1 + $0x2] ss:$4 sm:$0xff] %v928_v41 }
 0x13a   :  { %v569_v50 = vpop.permute.xlu1 %568  ;;  %v489_v21 = vpop.permute.xlu0 %488  ;;  %v931_v26 = vrot.slane %v828_v20, 4  ;;  %v930_v43 = vrot.slane %v828_v20, 2  ;;  %v932_v31 = vrot.slane %v828_v20, 6 }
 0x13b   :  { %v606_v53 = vsel %vm342_vm1, %v602_v44, %v569_v50  ;;  %v590_v28 = vsel %vm314_vm13, %v586_v49, %v489_v21  ;;  %v491_v9 = vpop.permute.xlu2 %490 }
 0x13c   :  { %v618_v54 = vrot.slane %v606_v53, 4  ;;  %v594_v55 = vsel %vm321_vm14, %v590_v28, %v513_v46 }
 0x13d   :  { %v598_v56 = vsel %vm328_vm15, %v594_v55, %v535_v36 }
 0x13e   :  { %v624_v51 = vsel %vm154_vm7, %v598_v56, %v618_v54  ;;  %v625_v60 = vsel %vm154_vm7, %v618_v54, %v598_v56  ;;  %v867_v57 = vpop.f32.mrf.mxu2  ;;  %v904_v32 = vpop.f32.mrf.mxu3 }
 0x13f   :  { %v626_v47 = vrot.slane %v625_v60, 4  ;;  %676 = vst [vmem:[#allocation1 + $0x20] ss:$2 sm:$0xff] %v624_v51  ;;  %v1136_v32 = vld [vmem:[%s2123_s4 + $0x98] sm:$0xff] }
 0x140   :  { %v955_v33 = vld.sshfl [vmem:[#allocation1] sm:$0xff pattern:$0x73625140]  ;;  %1176 = vmatpush.msrb.mxu3 %v1136_v32 }
 0x141   :  { %678 = vst [vmem:[#allocation1 + $0x21] ss:$2 sm:$0xff] %v626_v47  ;;  %v977_v48 = vsel %vm314_vm13, %v955_v33, -inf }
 0x142   :  { %v455_v61 = vpop.permute.xlu1 %454  ;;  %v437_v45 = vpop.permute.xlu0 %436 }
 0x143   :  { %v579_v24 = vsel %vm31_vm0, %v1824_v52, %v437_v45  ;;  %vm979_vm0 = vcmask 648192  }
 0x144   :  { %v583_v8 = vsel %vm300_vm10, %v579_v24, %v455_v61 }
 0x145   :  { %v587_v63 = vsel %vm307_vm11, %v583_v8, %v473_v1  ;;  %v1131_v8 = vld [vmem:[%s2123_s4 + $0x70] sm:$0xff] }
 0x146   :  { %v591_v42 = vsel %vm314_vm13, %v587_v63, %v491_v9  ;;  %v1135_v63 = vld [vmem:[%s2123_s4 + $0x90] sm:$0xff] }
 0x147   :  { %1177 = vmatpush.msrb.mxu3 %v1135_v63 }
 0x148   :  { %v685_v59 = vld.sshfl [vmem:[#allocation1 + $0x20] sm:$0xff pattern:$0x75316420]  ;;  %v686_v2 = vld.sshfl [vmem:[#allocation1 + $0x28] sm:$0xff pattern:$0x75316420] }
 0x149   :  { %800 = vmatmul.f32.gmra.mxu0 %v685_v59  ;;  %1248 = vmatmul.msk.f32.gmra.mxu1 %vm742_vm9, %v686_v2 }
 0x14a   :  { %878 = vmatmul.f32.gmra.mxu2 %v685_v59  ;;  %1257 = vmatmul.msk.f32.gmra.mxu3 %vm742_vm9, %v686_v2  ;;  %v559_v6 = vpop.permute.xlu1 %558  ;;  %v537_v7 = vpop.permute.xlu0 %536 }
 0x14b   :  { %v603_v11 = vsel %vm335_vm12, %v537_v7, %v559_v6  ;;  %vm1235_vm12 = vcmask 1024  }
 0x153   :  { %v515_v3 = vpop.permute.xlu1 %514  ;;  %v571_v13 = vpop.permute.xlu0 %570 }
 0x154   :  { %v595_v15 = vsel %vm321_vm14, %v591_v42, %v515_v3  ;;  %v607_v52 = vsel %vm342_vm1, %v603_v11, %v571_v13  ;;  %v1130_v11 = vld [vmem:[%s2123_s4 + $0x68] sm:$0xff] }
 0x155   :  { %v599_v18 = vsel %vm328_vm15, %v595_v15, %v537_v7  ;;  %v619_v58 = vrot.slane %v607_v52, 4  ;;  %v1132_v7 = vld [vmem:[%s2123_s4 + $0x78] sm:$0xff]  ;;  %v1129_v15 = vld [vmem:[%s2123_s4 + $0x60] sm:$0xff] }
 0x156   :  { %1144 = vmatpush.msrb.mxu1 %v1132_v7 }
 0x157   :  { %v627_v19 = vsel %vm154_vm7, %v599_v18, %v619_v58  ;;  %vm1056_vm7 = vcmask 1044096  }
 0x158   :  { %680 = vst [vmem:[#allocation1 + $0x30] ss:$2 sm:$0xff] %v627_v19  ;;  %1145 = vmatpush.msrb.mxu1 %v1131_v8 }
 0x15a   :  { %1146 = vmatpush.msrb.mxu1 %v1130_v11 }
 0x15c   :  { %v789_v22 = vpop.f32.mrf.mxu0  ;;  %v830_v23 = vpop.f32.mrf.mxu1  ;;  %1147 = vmatpush.msrb.mxu1 %v1129_v15 }
 0x15d   :  { %v831_v12 = vadd.f32 %v830_v23, %v789_v22 }
 0x15f   :  { %v687_v29 = vld.sshfl [vmem:[#allocation1 + $0x30] sm:$0xff pattern:$0x75316420]  ;;  %v688_v30 = vld.sshfl [vmem:[#allocation1 + $0x38] sm:$0xff pattern:$0x75316420] }
 0x160   :  { %948 = vst [vmem:[#allocation1 + $0x20] ss:$4 sm:$0xff] %v828_v20  ;;  %803 = vmatmul.f32.gmra.mxu0 %v687_v29  ;;  %1249 = vmatmul.msk.f32.gmra.mxu1 %vm742_vm9, %v688_v30  ;;  %v933_v25 = vrot.slane %v831_v12, 2  ;;  %v934_v34 = vrot.slane %v831_v12, 4  ;;  %v935_v37 = vrot.slane %v831_v12, 6 }
 0x161   :  { %952 = vst [vmem:[#allocation1 + $0x22] ss:$4 sm:$0xff] %v931_v26  ;;  %881 = vmatmul.f32.gmra.mxu2 %v687_v29  ;;  %1258 = vmatmul.msk.f32.gmra.mxu3 %vm742_vm9, %v688_v30 }
 0x162   :  { %950 = vst [vmem:[#allocation1 + $0x21] ss:$4 sm:$0xff] %v930_v43 }
 0x163   :  { %954 = vst [vmem:[#allocation1 + $0x23] ss:$4 sm:$0xff] %v932_v31  ;;  %v869_v5 = vpop.f32.mrf.mxu2  ;;  %v906_v62 = vpop.f32.mrf.mxu3  ;;  %v1127_v31 = vld [vmem:[%s2123_s4 + $0x50] sm:$0xff] }
 0x164   :  { %957 = vst [vmem:[#allocation1] ss:$4 sm:$0xff] %v831_v12  ;;  %v1128_v12 = vld [vmem:[%s2123_s4 + $0x58] sm:$0xff] }
 0x165   :  { %1148 = vmatpush.msrb.mxu1 %v1128_v12 }
 0x167   :  { %1149 = vmatpush.msrb.mxu1 %v1127_v31 }
 0x16a   :  { %v956_v0 = vld.sshfl [vmem:[#allocation1 + $0x20] sm:$0xff pattern:$0x73625140] }
 0x16b   :  { %959 = vst [vmem:[#allocation1 + $0x20] ss:$4 sm:$0xff] %v933_v25  ;;  %v958_v40 = vld.sshfl [vmem:[#allocation1] sm:$0xff pattern:$0x73625140]  ;;  %v978_v53 = vsel %vm314_vm13, %v956_v0, -inf }
 0x16c   :  { %960 = vst [vmem:[#allocation1 + $0x21] ss:$4 sm:$0xff] %v934_v34  ;;  %v980_v41 = vsel %vm979_vm0, %v958_v40, -inf  ;;  %v1123_v40 = vld [vmem:[%s2123_s4 + $0x30] sm:$0xff] }
 0x16d   :  { %961 = vst [vmem:[#allocation1 + $0x22] ss:$4 sm:$0xff] %v935_v37  ;;  %v981_v50 = vmax.f32 %v977_v48, %v980_v41  ;;  %v1121_v48 = vld [vmem:[%s2123_s4 + $0x20] sm:$0xff] }
 0x16f   :  { %v982_v54 = vmax.f32 %v981_v50, %v978_v53 }
 0x171   :  { %v983_v60 = vrot.slane %v982_v54, 4 }
 0x173   :  { %v984_v61 = vmax.f32 %v982_v54, %v983_v60 }
 0x175   :  { %v985_v24 = vrot.slane %v984_v61, 2 }
 0x177   :  { %v986_v3 = vmax.f32 %v984_v61, %v985_v24 }
 0x179   :  { %v987_v58 = vrot.slane %v986_v3, 1 }
 0x17b   :  { %v988_v22 = vmax.f32 %v986_v3, %v987_v58 }
 0x17e   :  { %v792_v38 = vpop.f32.mrf.mxu0  ;;  %v833_v10 = vpop.f32.mrf.mxu1 }
 0x17f   :  { %v834_v36 = vadd.f32 %v833_v10, %v792_v38  ;;  %v1126_v10 = vld [vmem:[%s2123_s4 + $0x48] sm:$0xff] }
 0x180   :  { %1150 = vmatpush.msrb.mxu1 %v1126_v10 }
 0x181   :  { %v936_v39 = vrot.slane %v834_v36, 2  ;;  %v937_v35 = vrot.slane %v834_v36, 4  ;;  %v938_v27 = vrot.slane %v834_v36, 6  ;;  %962 = vst [vmem:[#allocation1 + $0x23] ss:$4 sm:$0xff] %v834_v36  ;;  %v1125_v36 = vld [vmem:[%s2123_s4 + $0x40] sm:$0xff] }
 0x182   :  { %1151 = vmatpush.msrb.mxu1 %v1125_v36 }
 0x183   :  { %964 = vst [vmem:[#allocation1] ss:$4 sm:$0xff] %v936_v39  ;;  %v1134_v39 = vld [vmem:[%s2123_s4 + $0x88] sm:$0xff] }
 0x184   :  { %965 = vst [vmem:[#allocation1 + $0x1] ss:$4 sm:$0xff] %v937_v35  ;;  %1178 = vmatpush.msrb.mxu3 %v1134_v39  ;;  %v1124_v35 = vld [vmem:[%s2123_s4 + $0x38] sm:$0xff] }
 0x185   :  { %v871_v14 = vpop.f32.mrf.mxu2  ;;  %v908_v4 = vpop.f32.mrf.mxu3  ;;  %966 = vst [vmem:[#allocation1 + $0x2] ss:$4 sm:$0xff] %v938_v27  ;;  %v1133_v27 = vld [vmem:[%s2123_s4 + $0x80] sm:$0xff]  ;;  %1152 = vmatpush.msrb.mxu1 %v1124_v35 }
 0x186   :  { %1179 = vmatpush.msrb.mxu3 %v1133_v27  ;;  %v1122_v14 = vld [vmem:[%s2123_s4 + $0x28] sm:$0xff] }
 0x187   :  { %1153 = vmatpush.msrb.mxu1 %v1123_v40 }
 0x188   :  { %v963_v28 = vld.sshfl [vmem:[#allocation1 + $0x20] sm:$0xff pattern:$0x73625140] }
 0x189   :  { %v989_v45 = vsel %vm314_vm13, %v963_v28, -inf  ;;  %1154 = vmatpush.msrb.mxu1 %v1122_v14  ;;  %v1117_v28 = vld [vmem:[%s2123_s4] sm:$0xff] }
 0x18b   :  { %1155 = vmatpush.msrb.mxu1 %v1121_v48 }
 0x19d   :  { %v795_v44 = vpop.f32.mrf.mxu0  ;;  %v836_v49 = vpop.f32.mrf.mxu1 }
 0x19e   :  { %v837_v21 = vadd.f32 %v836_v49, %v795_v44  ;;  %v1120_v44 = vld [vmem:[%s2123_s4 + $0x18] sm:$0xff]  ;;  %v1119_v49 = vld [vmem:[%s2123_s4 + $0x10] sm:$0xff] }
 0x19f   :  { %1156 = vmatpush.msrb.mxu1 %v1120_v44 }
 0x1a0   :  { %v939_v46 = vrot.slane %v837_v21, 2  ;;  %967 = vst [vmem:[#allocation1 + $0x3] ss:$4 sm:$0xff] %v837_v21 }
 0x1a1   :  { %1157 = vmatpush.msrb.mxu1 %v1119_v49 }
 0x1a2   :  { %968 = vst [vmem:[#allocation1 + $0x20] ss:$4 sm:$0xff] %v939_v46  ;;  %v1118_v46 = vld [vmem:[%s2123_s4 + $0x8] sm:$0xff] }
 0x1a3   :  { %1158 = vmatpush.msrb.mxu1 %v1118_v46  ;;  %v1185_v46 = vld [vmem:[%s2125_s6] sm:$0xff] }
 0x1a4   :  { %v873_v55 = vpop.f32.mrf.mxu2  ;;  %v910_v56 = vpop.f32.mrf.mxu3 }
 0x1a5   :  { %v911_v51 = vadd.f32 %v910_v56, %v873_v55  ;;  %1159 = vmatpush.msrb.mxu1 %v1117_v28  ;;  %v1270_v28 = vld [vmem:[%s2122_s5] ss:$0 sm:$0xff] }
 0x1a7   :  { %v969_v57 = vld.sshfl [vmem:[#allocation1] sm:$0xff pattern:$0x73625140]  ;;  %1008 = vst.sshfl [vmem:[#allocation1 + $0x8] sm:$0xff pattern:$0x75316420] %v911_v51 }
 0x1a8   :  { %1007 = vst.sshfl [vmem:[#allocation1] sm:$0xff pattern:$0x75316420] %v837_v21  ;;  %v990_v2 = vsel %vm314_vm13, %v969_v57, -inf }
 0x1a9   :  { %v970_v47 = vld.sshfl [vmem:[#allocation1 + $0x20] sm:$0xff pattern:$0x73625140] }
 0x1aa   :  { %v991_v1 = vsel %vm979_vm0, %v970_v47, -inf }
 0x1ab   :  { %v992_v59 = vmax.f32 %v989_v45, %v991_v1 }
 0x1ad   :  { %v993_v6 = vmax.f32 %v992_v59, %v990_v2 }
 0x1af   :  { %v1016_v9 = vld [vmem:[#allocation1 + $0x1] ss:$2 sm:$0xff]  ;;  %v994_v42 = vrot.slane %v993_v6, 4 }
 0x1b0   :  { %1027 = vst [vmem:[#allocation1] ss:$2 sm:$0xff] %v1016_v9 }
 0x1b1   :  { %v995_v13 = vmax.f32 %v993_v6, %v994_v42 }
 0x1b3   :  { %v798_v52 = vpop.f32.mrf.mxu0  ;;  %v839_v16 = vpop.f32.mrf.mxu1  ;;  %v996_v17 = vrot.slane %v995_v13, 2 }
 0x1b4   :  { %v840_v18 = vadd.f32 %v839_v16, %v798_v52 }
 0x1b5   :  { %v997_v19 = vmax.f32 %v995_v13, %v996_v17 }
 0x1b6   :  { %1009 = vst.sshfl [vmem:[#allocation1 + $0x10] sm:$0xff pattern:$0x75316420] %v840_v18 }
 0x1b7   :  { %v998_v20 = vrot.slane %v997_v19, 1 }
 0x1b9   :  { %v999_v23 = vmax.f32 %v997_v19, %v998_v20 }
 0x1ba   :  { %v876_v26 = vpop.f32.mrf.mxu2  ;;  %v913_v29 = vpop.f32.mrf.mxu3 }
 0x1bb   :  { %v914_v30 = vadd.f32 %v913_v29, %v876_v26  ;;  %v2037_v43 = vsel %vm1095_vm2, %v999_v23, %v988_v22 }
 0x1bd   :  { %1010 = vst.sshfl [vmem:[#allocation1 + $0x18] sm:$0xff pattern:$0x75316420] %v914_v30 }
 0x1c4   :  { %v1018_v5 = vld [vmem:[#allocation1 + $0x10] ss:$2 sm:$0xff]  ;;  %v1020_v62 = vld [vmem:[#allocation1 + $0x11] ss:$2 sm:$0xff] }
 0x1c5   :  { %1029 = vst [vmem:[#allocation1 + $0x1] ss:$2 sm:$0xff] %v1018_v5 }
 0x1c6   :  { %1031 = vst [vmem:[#allocation1 + $0x10] ss:$2 sm:$0xff] %v1020_v62  ;;  %v801_v33 = vpop.f32.mrf.mxu0  ;;  %v842_v25 = vpop.f32.mrf.mxu1 }
 0x1c7   :  { %v843_v34 = vadd.f32 %v842_v25, %v801_v33  ;;  %v1107_v33 = vld [vmem:[%s2124_s3] sm:$0x3] }
 0x1c8   :  { %v1110_v10 = vperm.slane %v1107_v33, 1  ;;  %v1109_v27 = vperm.slane %v1107_v33, 0 }
 0x1c9   :  { %1011 = vst.sshfl [vmem:[#allocation1 + $0x20] sm:$0xff pattern:$0x75316420] %v843_v34 }
 0x1cc   :  { %v1033_v54 = vld.sshfl [vmem:[#allocation1 + $0x8] sm:$0xff pattern:$0x75316420]  ;;  %v1032_v57 = vld.sshfl [vmem:[#allocation1] sm:$0xff pattern:$0x75316420] }
 0x1cd   :  { %v879_v0 = vpop.f32.mrf.mxu2  ;;  %v916_v37 = vpop.f32.mrf.mxu3  ;;  %v1035_v55 = vld.sshfl [vmem:[#allocation1 + $0x18] sm:$0xff pattern:$0x75316420]  ;;  %v1065_v32 = vsel %vm342_vm1, %v1033_v54, -inf  ;;  %v1055_v1 = vsel %vm1054_vm6, %v1032_v57, -inf }
 0x1ce   :  { %v917_v38 = vadd.f32 %v916_v37, %v879_v0  ;;  %v1067_v47 = vsel %vm1066_vm5, %v1035_v55, -inf  ;;  %v1034_v61 = vld.sshfl [vmem:[#allocation1 + $0x10] sm:$0xff pattern:$0x75316420] }
 0x1cf   :  { %v1068_v45 = vmax.f32 %v1065_v32, %v1067_v47  ;;  %v1057_v59 = vsel %vm1056_vm7, %v1034_v61, -inf }
 0x1d0   :  { %1012 = vst.sshfl [vmem:[#allocation1 + $0x28] sm:$0xff pattern:$0x75316420] %v917_v38  ;;  %v1058_v2 = vmax.f32 %v1055_v1, %v1057_v59 }
 0x1d1   :  { %v1069_v24 = vrot.slane %v1068_v45, 4 }
 0x1d2   :  { %v1059_v7 = vrot.slane %v1058_v2, 4 }
 0x1d3   :  { %v1070_v8 = vmax.f32 %v1068_v45, %v1069_v24 }
 0x1d4   :  { %v1060_v42 = vmax.f32 %v1058_v2, %v1059_v7 }
 0x1d5   :  { %v1071_v11 = vrot.slane %v1070_v8, 2 }
 0x1d6   :  { %v1061_v58 = vrot.slane %v1060_v42, 2 }
 0x1d7   :  { %v1022_v4 = vld [vmem:[#allocation1 + $0x20] ss:$2 sm:$0xff]  ;;  %v1024_v41 = vld [vmem:[#allocation1 + $0x21] ss:$2 sm:$0xff]  ;;  %v1072_v23 = vmax.f32 %v1070_v8, %v1071_v11 }
 0x1d8   :  { %1037 = vst [vmem:[#allocation1 + $0x20] ss:$2 sm:$0xff] %v1022_v4  ;;  %v1062_v29 = vmax.f32 %v1060_v42, %v1061_v58 }
 0x1d9   :  { %1039 = vst [vmem:[#allocation1 + $0x21] ss:$2 sm:$0xff] %v1024_v41  ;;  %v1073_v5 = vrot.slane %v1072_v23, 1 }
 0x1da   :  { %v1063_v25 = vrot.slane %v1062_v29, 1 }
 0x1db   :  { %v1074_v38 = vmax.f32 %v1072_v23, %v1073_v5 }
 0x1dc   :  { %v1064_v39 = vmax.f32 %v1062_v29, %v1063_v25 }
 0x1dd   :  { %v804_v50 = vpop.f32.mrf.mxu0  ;;  %v845_v21 = vpop.f32.mrf.mxu1 }
 0x1de   :  { %v846_v53 = vadd.f32 %v845_v21, %v804_v50  ;;  %v1188_v50 = vld [vmem:[%s2125_s6 + $0x18] sm:$0xff]  ;;  %v1187_v21 = vld [vmem:[%s2125_s6 + $0x10] sm:$0xff] }
 0x1df   :  { %1208 = vmatpush.msra.mxu1 %v1188_v50 }
 0x1e0   :  { %1013 = vst.sshfl [vmem:[#allocation1 + $0x30] sm:$0xff pattern:$0x75316420] %v846_v53  ;;  %v1043_v9 = vld.sshfl [vmem:[#allocation1 + $0x28] sm:$0xff pattern:$0x75316420]  ;;  %v13_v53 = vstv %s2126_s7 }
 0x1e1   :  { %v1042_v63 = vld.sshfl [vmem:[#allocation1 + $0x20] sm:$0xff pattern:$0x75316420]  ;;  %v1084_v15 = vsel %vm342_vm1, %v1043_v9, -inf  ;;  %1209 = vmatpush.msra.mxu1 %v1187_v21  ;;  %14 = vst [vmem:[#allocation4] sm:$0x1] %v13_v53 }
 0x1e2   :  { %v1075_v16 = vsel %vm1054_vm6, %v1042_v63, -inf }
 0x1e4   :  { %v882_v56 = vpop.f32.mrf.mxu2  ;;  %v919_v51 = vpop.f32.mrf.mxu3 }
 0x1e5   :  { %v920_v60 = vadd.f32 %v919_v51, %v882_v56 }
 0x1e7   :  { %1014 = vst.sshfl [vmem:[#allocation1 + $0x38] sm:$0xff pattern:$0x75316420] %v920_v60 }
 0x1e8   :  { %v1271_v57 = vld [vmem:[#allocation4] ss:$0 sm:$0xff] }
 0x1ee   :  { %v1026_v6 = vld [vmem:[#allocation1 + $0x30] ss:$2 sm:$0xff] }
 0x1ef   :  { %1041 = vst [vmem:[#allocation1 + $0x30] ss:$2 sm:$0xff] %v1026_v6 }
 0x1f6   :  { %v1045_v3 = vld.sshfl [vmem:[#allocation1 + $0x38] sm:$0xff pattern:$0x75316420]  ;;  %v1044_v13 = vld.sshfl [vmem:[#allocation1 + $0x30] sm:$0xff pattern:$0x75316420] }
 0x1f7   :  { %v1085_v52 = vsel %vm1066_vm5, %v1045_v3, -inf  ;;  %v1076_v17 = vsel %vm1056_vm7, %v1044_v13, -inf }
 0x1f8   :  { %v1086_v18 = vmax.f32 %v1084_v15, %v1085_v52  ;;  %v1077_v19 = vmax.f32 %v1075_v16, %v1076_v17 }
 0x1fa   :  { %v1087_v20 = vrot.slane %v1086_v18, 4  ;;  %v1078_v22 = vrot.slane %v1077_v19, 4 }
 0x1fc   :  { %v1088_v26 = vmax.f32 %v1086_v18, %v1087_v20  ;;  %v1079_v30 = vmax.f32 %v1077_v19, %v1078_v22 }
 0x1fe   :  { %v1089_v12 = vrot.slane %v1088_v26, 2  ;;  %v1080_v31 = vrot.slane %v1079_v30, 2 }
 0x200   :  { %v1090_v62 = vmax.f32 %v1088_v26, %v1089_v12  ;;  %v1081_v34 = vmax.f32 %v1079_v30, %v1080_v31 }
 0x202   :  { %v1091_v0 = vrot.slane %v1090_v62, 1  ;;  %v1082_v37 = vrot.slane %v1081_v34, 1 }
 0x204   :  { %v1092_v36 = vmax.f32 %v1090_v62, %v1091_v0  ;;  %v1083_v35 = vmax.f32 %v1081_v34, %v1082_v37 }
 0x206   :  { %v1103_v40 = vsel %vm1095_vm2, %v1092_v36, %v1074_v38  ;;  %v1102_v14 = vsel %vm1095_vm2, %v1083_v35, %v1064_v39 }
 0x207   :  { %v1114_v4 = vadd.f32 %v1110_v10, %v1103_v40  ;;  %v1106_v41 = vsel %vm314_vm13, %v2037_v43, %v1102_v14  ;;  %v1186_v43 = vld [vmem:[%s2125_s6 + $0x8] sm:$0xff] }
 0x208   :  { %v1113_v48 = vadd.f32 %v1109_v27, %v1106_v41  ;;  %1210 = vmatpush.msra.mxu1 %v1186_v43 }
 0x209   :  { %v1116_v44 = vmax.f32 %v1114_v4, 0.0 }
 0x20a   :  { %v1115_v49 = vmax.f32 %v1113_v48, 0.0  ;;  %1211 = vmatpush.msra.mxu1 %v1185_v46 }
 0x20b   :  { %1259 = vmatmul.msk.f32.vlgmr.msrb.gmra.mxu3 %vm342_vm1, %v1116_v44 }
 0x20c   :  { %1160 = vmatmul.f32.vlgmr.msrb.gmra.mxu1 %v1115_v49 }
 0x289   :  { %v1161_v54 = vpop.f32.mrf.mxu1 }
 0x28a   :  { %v1162_v55 = vadd.f32 %v1270_v28, %v1161_v54 }
 0x28e   :  { %v1181_v56 = vpop.f32.mrf.mxu3 }
 0x28f   :  { %v1182_v51 = vadd.f32 %v1181_v56, %v1162_v55 }
 0x291   :  { %v1184_v60 = vmax.f32 %v1182_v51, 0.0 }
 0x293   :  { %1260 = vmatmul.msk.f32.vlgmr.msra.gmra.mxu1 %vm342_vm1, %v1184_v60 }
 0x310   :  { %v1213_v32 = vpop.f32.mrf.mxu1 }
 0x311   :  { %v1214_v47 = vadd.f32 %v1271_v57, %v1213_v32 }
 0x313   :  { %v1216_v61 = vsub.f32 0.0, %v1214_v47 }
 0x315   :  { %v1217_v45 = vmul.f32 1.442695, %v1216_v61 }
 0x317   :  { %1272 = vpow2.f32 %v1217_v45 }
 0x31d   :  { %v1273_v1 = vpop.eup %1272 }
 0x31e   :  { %v1219_v59 = vadd.f32 1.0, %v1273_v1 }
 0x320   :  { %1274 = vrcp.f32 %v1219_v59  ;;  %v1231_v7 = vand.u32 2147483648, %v1219_v59  ;;  %v1229_v9 = vand.u32 2147483647, %v1219_v59  ;;  %vm1225_vm10 = vweird.f32 %v1219_v59 }
 0x322   :  { %v1232_v42 = vor.u32 1.1754944e-38, %v1231_v7  ;;  %vm1230_vm13 = vcmp.eq.f32.partialorder %v1229_v9, 8.507059e+37 }
 0x326   :  { %v1275_v2 = vpop.eup %1274 }
 0x327   :  { %v1221_v24 = vmul.f32 %v1275_v2, %v1219_v59  ;;  %vm1226_vm8 = vweird.f32 %v1275_v2 }
 0x328   :  { %vm1227_vm11 = vmor %vm1225_vm10, %vm1226_vm8 }
 0x329   :  { %v1222_v6 = vsub.f32 1.0, %v1221_v24 }
 0x32b   :  { %v1223_v8 = vmul.f32 %v1275_v2, %v1222_v6 }
 0x32d   :  { %v1224_v63 = vadd.f32 %v1275_v2, %v1223_v8 }
 0x32f   :  { %v1228_v11 = vsel %vm1227_vm11, %v1275_v2, %v1224_v63 }
 0x330   :  { %v1233_v3 = vsel %vm1230_vm13, %v1232_v42, %v1228_v11 }
 0x331   :  { %1236 = vst.msk [vmem:[%s2127_s8] sm:$0x3] %vm1235_vm12, %v1233_v3 }

</bundles_post_ra>
